<compile_context>
chip_gen: v6e
topology: v6e:2x2x1
jax: 0.10.0
libtpu: 0.0.40
codegen_flags: <defaults>
</compile_context>

<pallas_src>
import math
from functools import partial

import numpy as np
import jax
import jax.numpy as jnp
from jax import lax
from jax.experimental import pallas as pl
from jax.experimental.pallas import tpu as pltpu


# ---------------------------------------------------------------------------
# Fused kernel body
# ---------------------------------------------------------------------------

def _sigmoid(x):
    # exp routes to the EUP slot; exact divide keeps the GRU recurrence tight numerically.
    return 1.0 / (1.0 + jnp.exp(-x))


def _gst_fused_kernel(x_ref,
                      r0_ref, m0_ref, b0_ref,
                      r1_ref, m1_ref, b1_ref,
                      r2_ref, m2_ref, b2_ref,
                      wih_ref, bih_ref, whh_ref, bhh_ref,
                      wq_ref, emb_ref, wk_ref, wv_ref,
                      wc_ref, bc_ref,
                      style_ref, prob_ref,
                      *, n_batch, t_steps, hidden, num_heads, head_dim, scale):
    f32 = jnp.float32

    def conv_layer(x, r_ref, m_ref, b_ref):
        # out = relu( sum_kh (R_kh @ x) @ M_kh + bias_row )
        # R encodes the stride-2 row selection (+ zero padding), M encodes the 3x3
        # weights x stride-2 column selection with the BN scale folded in.
        rows = jnp.dot(r_ref[0], x, preferred_element_type=f32)
        acc = jnp.dot(rows, m_ref[0], preferred_element_type=f32)
        for kh in (1, 2):
            rows = jnp.dot(r_ref[kh], x, preferred_element_type=f32)
            acc = acc + jnp.dot(rows, m_ref[kh], preferred_element_type=f32)
        return jnp.maximum(acc + b_ref[...], 0.0)

    # ---- ReferenceEncoder conv stack (conv + folded BN + ReLU, all in VMEM) ----
    x = x_ref[...].astype(f32)                        # (N*T, mel) rows = n*T + t
    x = conv_layer(x, r0_ref, m0_ref, b0_ref)         # (N*T1, M1*C1)
    x = conv_layer(x, r1_ref, m1_ref, b1_ref)         # (N*T2, M2*C2)
    feats = conv_layer(x, r2_ref, m2_ref, b2_ref)     # (T'*N, M'*C)  -- time-major rows

    # ---- GRU input projection: one MXU push for all timesteps ----
    xg = jnp.dot(feats, wih_ref[...], preferred_element_type=f32) + bih_ref[...]   # (T'*N, 3H)

    # ---- GRU recurrence, statically unrolled over T' steps (single h @ W_hh per step) ----
    h = jnp.zeros((n_batch, hidden), f32)
    for t in range(t_steps):
        xt = xg[t * n_batch:(t + 1) * n_batch, :]                                  # (N, 3H)
        hg = jnp.dot(h, whh_ref[...], preferred_element_type=f32) + bhh_ref[...]   # (N, 3H)
        r = _sigmoid(xt[:, :hidden] + hg[:, :hidden])
        z = _sigmoid(xt[:, hidden:2 * hidden] + hg[:, hidden:2 * hidden])
        n = jnp.tanh(xt[:, 2 * hidden:] + r * hg[:, 2 * hidden:])
        h = (1.0 - z) * n + z * h

    # ---- STL: query projection + tanh(token) key/value projections ----
    q = jnp.dot(h, wq_ref[...], preferred_element_type=f32)              # (N, E)
    tok = jnp.tanh(emb_ref[...].astype(f32))                             # (tok, dk)
    keys = jnp.dot(tok, wk_ref[...], preferred_element_type=f32)         # (tok, E)
    vals = jnp.dot(tok, wv_ref[...], preferred_element_type=f32)         # (tok, E)

    # ---- Multi-head attention (T_q = 1), heads unrolled in-kernel ----
    heads = []
    for hd in range(num_heads):
        lo, hi = hd * head_dim, (hd + 1) * head_dim
        s = lax.dot_general(q[:, lo:hi], keys[:, lo:hi],
                            (((1,), (1,)), ((), ())),
                            preferred_element_type=f32) * scale          # (N, tok)
        s = s - jnp.max(s, axis=-1, keepdims=True)
        p = jnp.exp(s)
        p = p * pl.reciprocal(jnp.sum(p, axis=-1, keepdims=True), approx=True)
        heads.append(jnp.dot(p, vals[:, lo:hi], preferred_element_type=f32))
    style = jnp.concatenate(heads, axis=-1)                              # (N, E)
    style_ref[...] = style.astype(style_ref.dtype)

    # ---- categorical layer + softmax ----
    logits = jnp.dot(style, wc_ref[...], preferred_element_type=f32) + bc_ref[...]
    logits = logits - jnp.max(logits, axis=-1, keepdims=True)
    e = jnp.exp(logits)
    prob_ref[...] = (e * pl.reciprocal(jnp.sum(e, axis=-1, keepdims=True),
                                       approx=True)).astype(prob_ref.dtype)


# ---------------------------------------------------------------------------
# pallas_call wrapper
# ---------------------------------------------------------------------------

def _full_spec(shape):
    zeros = (0,) * len(shape)
    return pl.BlockSpec(shape, lambda *_: zeros)


def gst_forward(packed, hp, inputs):
    N = inputs.shape[0]
    # torch: inputs.view(N, 1, -1, n_mel_channels); row-major flatten -> (N*T, mel).
    x2d = inputs.reshape(-1, hp.n_mel_channels).astype(jnp.float32)

    E = hp.token_embedding_size
    nh = hp.num_heads
    dh = E // nh
    H = packed["w_hh"].shape[0]
    t_steps = packed["r2"].shape[1] // N          # last conv layer rows = T' * N (time-major)
    classes = packed["cat_w"].shape[1]

    args = (x2d,
            packed["r0"], packed["m0"], packed["b0"],
            packed["r1"], packed["m1"], packed["b1"],
            packed["r2"], packed["m2"], packed["b2"],
            packed["w_ih"], packed["b_ih"], packed["w_hh"], packed["b_hh"],
            packed["wq"], packed["embed"], packed["wk"], packed["wv"],
            packed["cat_w"], packed["cat_b"])

    kernel = partial(_gst_fused_kernel, n_batch=N, t_steps=t_steps, hidden=H,
                     num_heads=nh, head_dim=dh, scale=1.0 / math.sqrt(dh))

    style, prob = pl.pallas_call(
        kernel,
        out_shape=(jax.ShapeDtypeStruct((N, E), jnp.float32),
                   jax.ShapeDtypeStruct((N, classes), jnp.float32)),
        grid=(1,),
        in_specs=[_full_spec(a.shape) for a in args],
        out_specs=(_full_spec((N, E)), _full_spec((N, classes))),
        compiler_params=pltpu.CompilerParams(dimension_semantics=("arbitrary",)),
    )(*args)

    return style.reshape(N, 1, E), prob.reshape(N, 1, classes)


# ---------------------------------------------------------------------------
# One-time parameter packing (host-side layout plumbing, no per-call XLA glue)
# ---------------------------------------------------------------------------

def _row_select(n_batch, h_in, h_out, kh, time_major):
    """R_kh[(out_row), (n*h_in + src)] = 1  with src = 2*i + kh - 1 (pad-1, stride-2)."""
    r = np.zeros((n_batch * h_out, n_batch * h_in), np.float32)
    for i in range(h_out):
        src = 2 * i + kh - 1
        if 0 <= src < h_in:
            for n in range(n_batch):
                row = i * n_batch + n if time_major else n * h_out + i
                r[row, n * h_in + src] = 1.0
    return r


def _col_project(w_hwio, bn_scale, w_in, w_out, kh):
    """M_kh[(w*cin + ci), (j*cout + co)] = W[kh, kw, ci, co] * scale[co],  kw = w - 2j + 1."""
    cin, cout = w_hwio.shape[2], w_hwio.shape[3]
    m = np.zeros((w_in * cin, w_out * cout), np.float32)
    for j in range(w_out):
        for kw in range(3):
            src = 2 * j + kw - 1
            if 0 <= src < w_in:
                m[src * cin:(src + 1) * cin, j * cout:(j + 1) * cout] = \
                    w_hwio[kh, kw] * bn_scale[None, :]
    return m


def pack_params(params, hp, n_batch, n_frames):
    """Turn PyTorch-layout parameters into kernel-ready (shape-specialized) operands."""
    packed = {}
    K = len(params["convs"])
    h, w, cin = n_frames, hp.n_mel_channels, 1
    for li, layer in enumerate(params["convs"]):
        w_hwio = np.asarray(layer["w_hwio"], np.float32)
        scale = np.asarray(layer["bn_scale"], np.float32)
        bias = np.asarray(layer["bn_bias"], np.float32) + scale * np.asarray(layer["b_conv"], np.float32)
        cout = w_hwio.shape[3]
        h_out, w_out = (h - 1) // 2 + 1, (w - 1) // 2 + 1
        time_major = (li == K - 1)                     # last layer emits time-major rows for the GRU
        packed[f"r{li}"] = jnp.asarray(
            np.stack([_row_select(n_batch, h, h_out, kh, time_major) for kh in range(3)]))
        packed[f"m{li}"] = jnp.asarray(
            np.stack([_col_project(w_hwio, scale, w, w_out, kh) for kh in range(3)]))
        packed[f"b{li}"] = jnp.asarray(np.tile(bias, w_out).reshape(1, w_out * cout))
        h, w, cin = h_out, w_out, cout

    # GRU input weight: permute rows from torch feature order (c*M' + m) to kernel order (m*C + c).
    c_last, m_last = cin, w
    perm = np.array([(idx % c_last) * m_last + (idx // c_last) for idx in range(c_last * m_last)])
    Hg = hp.ref_enc_gru_size
    packed["w_ih"] = jnp.asarray(np.asarray(params["gru"]["w_ih_t"], np.float32)[perm])
    packed["b_ih"] = jnp.asarray(params["gru"]["b_ih"], jnp.float32).reshape(1, 3 * Hg)
    packed["w_hh"] = jnp.asarray(params["gru"]["w_hh_t"], jnp.float32)
    packed["b_hh"] = jnp.asarray(params["gru"]["b_hh"], jnp.float32).reshape(1, 3 * Hg)

    packed["wq"] = jnp.asarray(params["stl"]["wq_t"], jnp.float32)
    packed["embed"] = jnp.asarray(params["stl"]["embed"], jnp.float32)
    packed["wk"] = jnp.asarray(params["stl"]["wk_t"], jnp.float32)
    packed["wv"] = jnp.asarray(params["stl"]["wv_t"], jnp.float32)

    packed["cat_w"] = jnp.asarray(params["cat"]["w"], jnp.float32)
    packed["cat_b"] = jnp.asarray(params["cat"]["b"], jnp.float32).reshape(1, -1)
    return packed


# ---------------------------------------------------------------------------
# Pure-JAX reference (golden, HIGHEST precision) and parameter init
# ---------------------------------------------------------------------------

class HParams:
    n_mel_channels = 32
    ref_enc_filters = (4, 8, 16)
    ref_enc_gru_size = 16            # == token_embedding_size // 2
    token_num = 8
    token_embedding_size = 32
    num_heads = 4


def gst_reference(params, hp, inputs):
    PH = lax.Precision.HIGHEST
    N = inputs.shape[0]
    out = inputs.reshape(N, -1, hp.n_mel_channels, 1).astype(jnp.float32)
    for layer in params["convs"]:
        out = lax.conv_general_dilated(out, layer["w_hwio"], (2, 2), ((1, 1), (1, 1)),
                                       dimension_numbers=("NHWC", "HWIO", "NHWC"),
                                       precision=PH)
        out = out + layer["b_conv"].reshape(1, 1, 1, -1)
        out = out * layer["bn_scale"].reshape(1, 1, 1, -1) + layer["bn_bias"].reshape(1, 1, 1, -1)
        out = jnp.maximum(out, 0.0)
    Np, Tp, Mp, C = out.shape
    feats = jnp.transpose(out, (0, 1, 3, 2)).reshape(Np, Tp, C * Mp)
    H = hp.ref_enc_gru_size
    xg = jnp.dot(feats, params["gru"]["w_ih_t"], precision=PH) + params["gru"]["b_ih"]
    h = jnp.zeros((Np, H), jnp.float32)
    for t in range(Tp):
        hg = jnp.dot(h, params["gru"]["w_hh_t"], precision=PH) + params["gru"]["b_hh"]
        xr, xz, xn = xg[:, t, :H], xg[:, t, H:2 * H], xg[:, t, 2 * H:]
        hr, hz, hn = hg[:, :H], hg[:, H:2 * H], hg[:, 2 * H:]
        r = jax.nn.sigmoid(xr + hr)
        z = jax.nn.sigmoid(xz + hz)
        n = jnp.tanh(xn + r * hn)
        h = (1.0 - z) * n + z * h
    E, nh = hp.token_embedding_size, hp.num_heads
    dh = E // nh
    q = jnp.dot(h, params["stl"]["wq_t"], precision=PH)
    tok = jnp.tanh(params["stl"]["embed"])
    keys = jnp.dot(tok, params["stl"]["wk_t"], precision=PH)
    vals = jnp.dot(tok, params["stl"]["wv_t"], precision=PH)
    qh = jnp.transpose(q.reshape(N, nh, dh), (1, 0, 2))
    kh = jnp.transpose(keys.reshape(hp.token_num, nh, dh), (1, 0, 2))
    vh = jnp.transpose(vals.reshape(hp.token_num, nh, dh), (1, 0, 2))
    s = jnp.einsum("hbd,htd->hbt", qh, kh, precision=PH) / math.sqrt(dh)
    p = jax.nn.softmax(s, axis=-1)
    oh = jnp.einsum("hbt,htd->hbd", p, vh, precision=PH)
    style = jnp.transpose(oh, (1, 0, 2)).reshape(N, E)
    logits = jnp.dot(style, params["cat"]["w"], precision=PH) + params["cat"]["b"]
    return style.reshape(N, 1, E), jax.nn.softmax(logits, axis=-1).reshape(N, 1, -1)


def init_params(key, hp, classes):
    counter = [0]

    def nk():
        counter[0] += 1
        return jax.random.fold_in(key, counter[0])

    convs = []
    filters = (1,) + tuple(hp.ref_enc_filters)
    mel = hp.n_mel_channels
    eps = 1e-5
    for i in range(len(hp.ref_enc_filters)):
        cin, cout = filters[i], filters[i + 1]
        w = jax.random.normal(nk(), (3, 3, cin, cout), jnp.float32) / math.sqrt(9 * cin)
        b_conv = 0.1 * jax.random.normal(nk(), (cout,), jnp.float32)
        gamma = 1.0 + 0.1 * jax.random.normal(nk(), (cout,), jnp.float32)
        beta = 0.1 * jax.random.normal(nk(), (cout,), jnp.float32)
        rmean = 0.1 * jax.random.normal(nk(), (cout,), jnp.float32)
        rvar = jnp.abs(1.0 + 0.1 * jax.random.normal(nk(), (cout,), jnp.float32))
        scale = gamma / jnp.sqrt(rvar + eps)
        bias = beta - rmean * scale
        convs.append({"w_hwio": w, "b_conv": b_conv, "bn_scale": scale, "bn_bias": bias})
        mel = (mel - 1) // 2 + 1

    F = hp.ref_enc_filters[-1] * mel
    H = hp.ref_enc_gru_size
    gru = {"w_ih_t": jax.random.normal(nk(), (F, 3 * H), jnp.float32) / math.sqrt(F),
           "b_ih": 0.1 * jax.random.normal(nk(), (3 * H,), jnp.float32),
           "w_hh_t": jax.random.normal(nk(), (H, 3 * H), jnp.float32) / math.sqrt(H),
           "b_hh": 0.1 * jax.random.normal(nk(), (3 * H,), jnp.float32)}

    E = hp.token_embedding_size
    dq, dk = E // 2, E // hp.num_heads
    stl = {"embed": 0.5 * jax.random.normal(nk(), (hp.token_num, dk), jnp.float32),
           "wq_t": jax.random.normal(nk(), (dq, E), jnp.float32) / math.sqrt(dq),
           "wk_t": jax.random.normal(nk(), (dk, E), jnp.float32) / math.sqrt(dk),
           "wv_t": jax.random.normal(nk(), (dk, E), jnp.float32) / math.sqrt(dk)}

    cat = {"w": jax.random.normal(nk(), (E, classes), jnp.float32) / math.sqrt(E),
           "b": 0.1 * jax.random.normal(nk(), (classes,), jnp.float32)}
    return {"convs": convs, "gru": gru, "stl": stl, "cat": cat}


if __name__ == "__main__":
    hp = HParams()
    classes = 5
    key = jax.random.PRNGKey(0)
    pkey, xkey = jax.random.split(key)
    params = init_params(pkey, hp, classes)

    # inputs: [N, Ty/r, n_mels*r] with r=1 -> (2, 32, 32)
    N, Tframes = 2, 32
    inputs = jax.random.normal(xkey, (N, Tframes, hp.n_mel_channels), jnp.float32)

    n_frames = (Tframes * inputs.shape[2]) // hp.n_mel_channels
    packed = pack_params(params, hp, n_batch=N, n_frames=n_frames)   # one-time weight prep

    run = jax.jit(lambda pk, x: gst_forward(pk, hp, x))
    style_embed, cat_prob = run(packed, inputs)
    style_embed = jax.block_until_ready(style_embed)
    cat_prob = jax.block_until_ready(cat_prob)

    ref_style, ref_prob = gst_reference(params, hp, inputs)

    assert style_embed.shape == (N, 1, hp.token_embedding_size), style_embed.shape
    assert cat_prob.shape == (N, 1, classes), cat_prob.shape
    err_style = float(jnp.max(jnp.abs(style_embed - ref_style)))
    err_prob = float(jnp.max(jnp.abs(cat_prob - ref_prob)))
    # Default (bf16-pass) MXU precision + approx reciprocals vs HIGHEST-precision golden.
    assert err_style < 2e-2 and err_prob < 2e-2, (err_style, err_prob)
    assert bool(jnp.all(jnp.isfinite(style_embed))) and bool(jnp.all(jnp.isfinite(cat_prob)))
    print("KERNEL_OK")
</pallas_src>

<mosaic_0001>
module attributes {stable_mosaic.version = 11 : i64} {
  func.func @_gst_fused_kernel(%arg0: i32, %arg1: memref<64x32xf32, #tpu.memory_space<vmem>>, %arg2: memref<3x32x64xf32, #tpu.memory_space<vmem>>, %arg3: memref<3x32x64xf32, #tpu.memory_space<vmem>>, %arg4: memref<1x64xf32, #tpu.memory_space<vmem>>, %arg5: memref<3x16x32xf32, #tpu.memory_space<vmem>>, %arg6: memref<3x64x64xf32, #tpu.memory_space<vmem>>, %arg7: memref<1x64xf32, #tpu.memory_space<vmem>>, %arg8: memref<3x8x16xf32, #tpu.memory_space<vmem>>, %arg9: memref<3x64x64xf32, #tpu.memory_space<vmem>>, %arg10: memref<1x64xf32, #tpu.memory_space<vmem>>, %arg11: memref<64x48xf32, #tpu.memory_space<vmem>>, %arg12: memref<1x48xf32, #tpu.memory_space<vmem>>, %arg13: memref<16x48xf32, #tpu.memory_space<vmem>>, %arg14: memref<1x48xf32, #tpu.memory_space<vmem>>, %arg15: memref<16x32xf32, #tpu.memory_space<vmem>>, %arg16: memref<8x8xf32, #tpu.memory_space<vmem>>, %arg17: memref<8x32xf32, #tpu.memory_space<vmem>>, %arg18: memref<8x32xf32, #tpu.memory_space<vmem>>, %arg19: memref<32x5xf32, #tpu.memory_space<vmem>>, %arg20: memref<1x5xf32, #tpu.memory_space<vmem>>, %arg21: memref<2x32xf32, #tpu.memory_space<vmem>>, %arg22: memref<2x5xf32, #tpu.memory_space<vmem>>) attributes {dimension_semantics = [#tpu.dimension_semantics<arbitrary>], iteration_bounds = array<i64: 1>, scalar_prefetch = 0 : i64, scratch_operands = 0 : i64, tpu.core_type = #tpu.core_type<tc>, window_params = [{pipeline_mode = #tpu.pipeline_mode<synchronous>, transform_indices = @transform_0, window_bounds = array<i64: 64, 32>}, {pipeline_mode = #tpu.pipeline_mode<synchronous>, transform_indices = @transform_1, window_bounds = array<i64: 3, 32, 64>}, {pipeline_mode = #tpu.pipeline_mode<synchronous>, transform_indices = @transform_2, window_bounds = array<i64: 3, 32, 64>}, {pipeline_mode = #tpu.pipeline_mode<synchronous>, transform_indices = @transform_3, window_bounds = array<i64: 1, 64>}, {pipeline_mode = #tpu.pipeline_mode<synchronous>, transform_indices = @transform_4, window_bounds = array<i64: 3, 16, 32>}, {pipeline_mode = #tpu.pipeline_mode<synchronous>, transform_indices = @transform_5, window_bounds = array<i64: 3, 64, 64>}, {pipeline_mode = #tpu.pipeline_mode<synchronous>, transform_indices = @transform_6, window_bounds = array<i64: 1, 64>}, {pipeline_mode = #tpu.pipeline_mode<synchronous>, transform_indices = @transform_7, window_bounds = array<i64: 3, 8, 16>}, {pipeline_mode = #tpu.pipeline_mode<synchronous>, transform_indices = @transform_8, window_bounds = array<i64: 3, 64, 64>}, {pipeline_mode = #tpu.pipeline_mode<synchronous>, transform_indices = @transform_9, window_bounds = array<i64: 1, 64>}, {pipeline_mode = #tpu.pipeline_mode<synchronous>, transform_indices = @transform_10, window_bounds = array<i64: 64, 48>}, {pipeline_mode = #tpu.pipeline_mode<synchronous>, transform_indices = @transform_11, window_bounds = array<i64: 1, 48>}, {pipeline_mode = #tpu.pipeline_mode<synchronous>, transform_indices = @transform_12, window_bounds = array<i64: 16, 48>}, {pipeline_mode = #tpu.pipeline_mode<synchronous>, transform_indices = @transform_13, window_bounds = array<i64: 1, 48>}, {pipeline_mode = #tpu.pipeline_mode<synchronous>, transform_indices = @transform_14, window_bounds = array<i64: 16, 32>}, {pipeline_mode = #tpu.pipeline_mode<synchronous>, transform_indices = @transform_15, window_bounds = array<i64: 8, 8>}, {pipeline_mode = #tpu.pipeline_mode<synchronous>, transform_indices = @transform_16, window_bounds = array<i64: 8, 32>}, {pipeline_mode = #tpu.pipeline_mode<synchronous>, transform_indices = @transform_17, window_bounds = array<i64: 8, 32>}, {pipeline_mode = #tpu.pipeline_mode<synchronous>, transform_indices = @transform_18, window_bounds = array<i64: 32, 5>}, {pipeline_mode = #tpu.pipeline_mode<synchronous>, transform_indices = @transform_19, window_bounds = array<i64: 1, 5>}, {pipeline_mode = #tpu.pipeline_mode<synchronous>, transform_indices = @transform_20, window_bounds = array<i64: 2, 32>}, {pipeline_mode = #tpu.pipeline_mode<synchronous>, transform_indices = @transform_21, window_bounds = array<i64: 2, 5>}]} {
    %c0 = arith.constant 0 : index
    %c0_0 = arith.constant 0 : index
    %0 = vector.load %arg1[%c0, %c0_0] : memref<64x32xf32, #tpu.memory_space<vmem>>, vector<64x32xf32>
    %c0_1 = arith.constant 0 : index
    %c0_2 = arith.constant 0 : index
    %c0_3 = arith.constant 0 : index
    %1 = vector.load %arg2[%c0_1, %c0_2, %c0_3] : memref<3x32x64xf32, #tpu.memory_space<vmem>>, vector<1x32x64xf32>
    %2 = vector.shape_cast %1 : vector<1x32x64xf32> to vector<32x64xf32>
    %cst = arith.constant dense<0.000000e+00> : vector<32x32xf32>
    %3 = tpu.matmul %2, %0, %cst {dimension_numbers = #tpu.dot_dimension_numbers<[1], [0], [0], [1], [0, 0, 1, 1], [], []>} : vector<32x64xf32>, vector<64x32xf32>, vector<32x32xf32> -> vector<32x32xf32>
    %c0_4 = arith.constant 0 : index
    %c0_5 = arith.constant 0 : index
    %c0_6 = arith.constant 0 : index
    %4 = vector.load %arg3[%c0_4, %c0_5, %c0_6] : memref<3x32x64xf32, #tpu.memory_space<vmem>>, vector<1x32x64xf32>
    %5 = vector.shape_cast %4 : vector<1x32x64xf32> to vector<32x64xf32>
    %cst_7 = arith.constant dense<0.000000e+00> : vector<32x64xf32>
    %6 = tpu.matmul %3, %5, %cst_7 {dimension_numbers = #tpu.dot_dimension_numbers<[1], [0], [0], [1], [0, 0, 1, 1], [], []>} : vector<32x32xf32>, vector<32x64xf32>, vector<32x64xf32> -> vector<32x64xf32>
    %c1 = arith.constant 1 : index
    %c0_8 = arith.constant 0 : index
    %c0_9 = arith.constant 0 : index
    %7 = vector.load %arg2[%c1, %c0_8, %c0_9] : memref<3x32x64xf32, #tpu.memory_space<vmem>>, vector<1x32x64xf32>
    %8 = vector.shape_cast %7 : vector<1x32x64xf32> to vector<32x64xf32>
    %cst_10 = arith.constant dense<0.000000e+00> : vector<32x32xf32>
    %9 = tpu.matmul %8, %0, %cst_10 {dimension_numbers = #tpu.dot_dimension_numbers<[1], [0], [0], [1], [0, 0, 1, 1], [], []>} : vector<32x64xf32>, vector<64x32xf32>, vector<32x32xf32> -> vector<32x32xf32>
    %c1_11 = arith.constant 1 : index
    %c0_12 = arith.constant 0 : index
    %c0_13 = arith.constant 0 : index
    %10 = vector.load %arg3[%c1_11, %c0_12, %c0_13] : memref<3x32x64xf32, #tpu.memory_space<vmem>>, vector<1x32x64xf32>
    %11 = vector.shape_cast %10 : vector<1x32x64xf32> to vector<32x64xf32>
    %cst_14 = arith.constant dense<0.000000e+00> : vector<32x64xf32>
    %12 = tpu.matmul %9, %11, %cst_14 {dimension_numbers = #tpu.dot_dimension_numbers<[1], [0], [0], [1], [0, 0, 1, 1], [], []>} : vector<32x32xf32>, vector<32x64xf32>, vector<32x64xf32> -> vector<32x64xf32>
    %13 = arith.addf %6, %12 : vector<32x64xf32>
    %c2 = arith.constant 2 : index
    %c0_15 = arith.constant 0 : index
    %c0_16 = arith.constant 0 : index
    %14 = vector.load %arg2[%c2, %c0_15, %c0_16] : memref<3x32x64xf32, #tpu.memory_space<vmem>>, vector<1x32x64xf32>
    %15 = vector.shape_cast %14 : vector<1x32x64xf32> to vector<32x64xf32>
    %cst_17 = arith.constant dense<0.000000e+00> : vector<32x32xf32>
    %16 = tpu.matmul %15, %0, %cst_17 {dimension_numbers = #tpu.dot_dimension_numbers<[1], [0], [0], [1], [0, 0, 1, 1], [], []>} : vector<32x64xf32>, vector<64x32xf32>, vector<32x32xf32> -> vector<32x32xf32>
    %c2_18 = arith.constant 2 : index
    %c0_19 = arith.constant 0 : index
    %c0_20 = arith.constant 0 : index
    %17 = vector.load %arg3[%c2_18, %c0_19, %c0_20] : memref<3x32x64xf32, #tpu.memory_space<vmem>>, vector<1x32x64xf32>
    %18 = vector.shape_cast %17 : vector<1x32x64xf32> to vector<32x64xf32>
    %cst_21 = arith.constant dense<0.000000e+00> : vector<32x64xf32>
    %19 = tpu.matmul %16, %18, %cst_21 {dimension_numbers = #tpu.dot_dimension_numbers<[1], [0], [0], [1], [0, 0, 1, 1], [], []>} : vector<32x32xf32>, vector<32x64xf32>, vector<32x64xf32> -> vector<32x64xf32>
    %20 = arith.addf %13, %19 : vector<32x64xf32>
    %c0_22 = arith.constant 0 : index
    %c0_23 = arith.constant 0 : index
    %21 = vector.load %arg4[%c0_22, %c0_23] : memref<1x64xf32, #tpu.memory_space<vmem>>, vector<1x64xf32>
    %22 = vector.broadcast %21 : vector<1x64xf32> to vector<32x64xf32>
    %23 = arith.addf %20, %22 : vector<32x64xf32>
    %cst_24 = arith.constant 0.000000e+00 : f32
    %24 = vector.broadcast %cst_24 : f32 to vector<32x64xf32>
    %25 = arith.maximumf %23, %24 : vector<32x64xf32>
    %c0_25 = arith.constant 0 : index
    %c0_26 = arith.constant 0 : index
    %c0_27 = arith.constant 0 : index
    %26 = vector.load %arg5[%c0_25, %c0_26, %c0_27] : memref<3x16x32xf32, #tpu.memory_space<vmem>>, vector<1x16x32xf32>
    %27 = vector.shape_cast %26 : vector<1x16x32xf32> to vector<16x32xf32>
    %cst_28 = arith.constant dense<0.000000e+00> : vector<16x64xf32>
    %28 = tpu.matmul %27, %25, %cst_28 {dimension_numbers = #tpu.dot_dimension_numbers<[1], [0], [0], [1], [0, 0, 1, 1], [], []>} : vector<16x32xf32>, vector<32x64xf32>, vector<16x64xf32> -> vector<16x64xf32>
    %c0_29 = arith.constant 0 : index
    %c0_30 = arith.constant 0 : index
    %c0_31 = arith.constant 0 : index
    %29 = vector.load %arg6[%c0_29, %c0_30, %c0_31] : memref<3x64x64xf32, #tpu.memory_space<vmem>>, vector<1x64x64xf32>
    %30 = vector.shape_cast %29 : vector<1x64x64xf32> to vector<64x64xf32>
    %cst_32 = arith.constant dense<0.000000e+00> : vector<16x64xf32>
    %31 = tpu.matmul %28, %30, %cst_32 {dimension_numbers = #tpu.dot_dimension_numbers<[1], [0], [0], [1], [0, 0, 1, 1], [], []>} : vector<16x64xf32>, vector<64x64xf32>, vector<16x64xf32> -> vector<16x64xf32>
    %c1_33 = arith.constant 1 : index
    %c0_34 = arith.constant 0 : index
    %c0_35 = arith.constant 0 : index
    %32 = vector.load %arg5[%c1_33, %c0_34, %c0_35] : memref<3x16x32xf32, #tpu.memory_space<vmem>>, vector<1x16x32xf32>
    %33 = vector.shape_cast %32 : vector<1x16x32xf32> to vector<16x32xf32>
    %cst_36 = arith.constant dense<0.000000e+00> : vector<16x64xf32>
    %34 = tpu.matmul %33, %25, %cst_36 {dimension_numbers = #tpu.dot_dimension_numbers<[1], [0], [0], [1], [0, 0, 1, 1], [], []>} : vector<16x32xf32>, vector<32x64xf32>, vector<16x64xf32> -> vector<16x64xf32>
    %c1_37 = arith.constant 1 : index
    %c0_38 = arith.constant 0 : index
    %c0_39 = arith.constant 0 : index
    %35 = vector.load %arg6[%c1_37, %c0_38, %c0_39] : memref<3x64x64xf32, #tpu.memory_space<vmem>>, vector<1x64x64xf32>
    %36 = vector.shape_cast %35 : vector<1x64x64xf32> to vector<64x64xf32>
    %cst_40 = arith.constant dense<0.000000e+00> : vector<16x64xf32>
    %37 = tpu.matmul %34, %36, %cst_40 {dimension_numbers = #tpu.dot_dimension_numbers<[1], [0], [0], [1], [0, 0, 1, 1], [], []>} : vector<16x64xf32>, vector<64x64xf32>, vector<16x64xf32> -> vector<16x64xf32>
    %38 = arith.addf %31, %37 : vector<16x64xf32>
    %c2_41 = arith.constant 2 : index
    %c0_42 = arith.constant 0 : index
    %c0_43 = arith.constant 0 : index
    %39 = vector.load %arg5[%c2_41, %c0_42, %c0_43] : memref<3x16x32xf32, #tpu.memory_space<vmem>>, vector<1x16x32xf32>
    %40 = vector.shape_cast %39 : vector<1x16x32xf32> to vector<16x32xf32>
    %cst_44 = arith.constant dense<0.000000e+00> : vector<16x64xf32>
    %41 = tpu.matmul %40, %25, %cst_44 {dimension_numbers = #tpu.dot_dimension_numbers<[1], [0], [0], [1], [0, 0, 1, 1], [], []>} : vector<16x32xf32>, vector<32x64xf32>, vector<16x64xf32> -> vector<16x64xf32>
    %c2_45 = arith.constant 2 : index
    %c0_46 = arith.constant 0 : index
    %c0_47 = arith.constant 0 : index
    %42 = vector.load %arg6[%c2_45, %c0_46, %c0_47] : memref<3x64x64xf32, #tpu.memory_space<vmem>>, vector<1x64x64xf32>
    %43 = vector.shape_cast %42 : vector<1x64x64xf32> to vector<64x64xf32>
    %cst_48 = arith.constant dense<0.000000e+00> : vector<16x64xf32>
    %44 = tpu.matmul %41, %43, %cst_48 {dimension_numbers = #tpu.dot_dimension_numbers<[1], [0], [0], [1], [0, 0, 1, 1], [], []>} : vector<16x64xf32>, vector<64x64xf32>, vector<16x64xf32> -> vector<16x64xf32>
    %45 = arith.addf %38, %44 : vector<16x64xf32>
    %c0_49 = arith.constant 0 : index
    %c0_50 = arith.constant 0 : index
    %46 = vector.load %arg7[%c0_49, %c0_50] : memref<1x64xf32, #tpu.memory_space<vmem>>, vector<1x64xf32>
    %47 = vector.broadcast %46 : vector<1x64xf32> to vector<16x64xf32>
    %48 = arith.addf %45, %47 : vector<16x64xf32>
    %cst_51 = arith.constant 0.000000e+00 : f32
    %49 = vector.broadcast %cst_51 : f32 to vector<16x64xf32>
    %50 = arith.maximumf %48, %49 : vector<16x64xf32>
    %c0_52 = arith.constant 0 : index
    %c0_53 = arith.constant 0 : index
    %c0_54 = arith.constant 0 : index
    %51 = vector.load %arg8[%c0_52, %c0_53, %c0_54] : memref<3x8x16xf32, #tpu.memory_space<vmem>>, vector<1x8x16xf32>
    %52 = vector.shape_cast %51 : vector<1x8x16xf32> to vector<8x16xf32>
    %cst_55 = arith.constant dense<0.000000e+00> : vector<8x64xf32>
    %53 = tpu.matmul %52, %50, %cst_55 {dimension_numbers = #tpu.dot_dimension_numbers<[1], [0], [0], [1], [0, 0, 1, 1], [], []>} : vector<8x16xf32>, vector<16x64xf32>, vector<8x64xf32> -> vector<8x64xf32>
    %c0_56 = arith.constant 0 : index
    %c0_57 = arith.constant 0 : index
    %c0_58 = arith.constant 0 : index
    %54 = vector.load %arg9[%c0_56, %c0_57, %c0_58] : memref<3x64x64xf32, #tpu.memory_space<vmem>>, vector<1x64x64xf32>
    %55 = vector.shape_cast %54 : vector<1x64x64xf32> to vector<64x64xf32>
    %cst_59 = arith.constant dense<0.000000e+00> : vector<8x64xf32>
    %56 = tpu.matmul %53, %55, %cst_59 {dimension_numbers = #tpu.dot_dimension_numbers<[1], [0], [0], [1], [0, 0, 1, 1], [], []>} : vector<8x64xf32>, vector<64x64xf32>, vector<8x64xf32> -> vector<8x64xf32>
    %c1_60 = arith.constant 1 : index
    %c0_61 = arith.constant 0 : index
    %c0_62 = arith.constant 0 : index
    %57 = vector.load %arg8[%c1_60, %c0_61, %c0_62] : memref<3x8x16xf32, #tpu.memory_space<vmem>>, vector<1x8x16xf32>
    %58 = vector.shape_cast %57 : vector<1x8x16xf32> to vector<8x16xf32>
    %cst_63 = arith.constant dense<0.000000e+00> : vector<8x64xf32>
    %59 = tpu.matmul %58, %50, %cst_63 {dimension_numbers = #tpu.dot_dimension_numbers<[1], [0], [0], [1], [0, 0, 1, 1], [], []>} : vector<8x16xf32>, vector<16x64xf32>, vector<8x64xf32> -> vector<8x64xf32>
    %c1_64 = arith.constant 1 : index
    %c0_65 = arith.constant 0 : index
    %c0_66 = arith.constant 0 : index
    %60 = vector.load %arg9[%c1_64, %c0_65, %c0_66] : memref<3x64x64xf32, #tpu.memory_space<vmem>>, vector<1x64x64xf32>
    %61 = vector.shape_cast %60 : vector<1x64x64xf32> to vector<64x64xf32>
    %cst_67 = arith.constant dense<0.000000e+00> : vector<8x64xf32>
    %62 = tpu.matmul %59, %61, %cst_67 {dimension_numbers = #tpu.dot_dimension_numbers<[1], [0], [0], [1], [0, 0, 1, 1], [], []>} : vector<8x64xf32>, vector<64x64xf32>, vector<8x64xf32> -> vector<8x64xf32>
    %63 = arith.addf %56, %62 : vector<8x64xf32>
    %c2_68 = arith.constant 2 : index
    %c0_69 = arith.constant 0 : index
    %c0_70 = arith.constant 0 : index
    %64 = vector.load %arg8[%c2_68, %c0_69, %c0_70] : memref<3x8x16xf32, #tpu.memory_space<vmem>>, vector<1x8x16xf32>
    %65 = vector.shape_cast %64 : vector<1x8x16xf32> to vector<8x16xf32>
    %cst_71 = arith.constant dense<0.000000e+00> : vector<8x64xf32>
    %66 = tpu.matmul %65, %50, %cst_71 {dimension_numbers = #tpu.dot_dimension_numbers<[1], [0], [0], [1], [0, 0, 1, 1], [], []>} : vector<8x16xf32>, vector<16x64xf32>, vector<8x64xf32> -> vector<8x64xf32>
    %c2_72 = arith.constant 2 : index
    %c0_73 = arith.constant 0 : index
    %c0_74 = arith.constant 0 : index
    %67 = vector.load %arg9[%c2_72, %c0_73, %c0_74] : memref<3x64x64xf32, #tpu.memory_space<vmem>>, vector<1x64x64xf32>
    %68 = vector.shape_cast %67 : vector<1x64x64xf32> to vector<64x64xf32>
    %cst_75 = arith.constant dense<0.000000e+00> : vector<8x64xf32>
    %69 = tpu.matmul %66, %68, %cst_75 {dimension_numbers = #tpu.dot_dimension_numbers<[1], [0], [0], [1], [0, 0, 1, 1], [], []>} : vector<8x64xf32>, vector<64x64xf32>, vector<8x64xf32> -> vector<8x64xf32>
    %70 = arith.addf %63, %69 : vector<8x64xf32>
    %c0_76 = arith.constant 0 : index
    %c0_77 = arith.constant 0 : index
    %71 = vector.load %arg10[%c0_76, %c0_77] : memref<1x64xf32, #tpu.memory_space<vmem>>, vector<1x64xf32>
    %72 = vector.broadcast %71 : vector<1x64xf32> to vector<8x64xf32>
    %73 = arith.addf %70, %72 : vector<8x64xf32>
    %cst_78 = arith.constant 0.000000e+00 : f32
    %74 = vector.broadcast %cst_78 : f32 to vector<8x64xf32>
    %75 = arith.maximumf %73, %74 : vector<8x64xf32>
    %c0_79 = arith.constant 0 : index
    %c0_80 = arith.constant 0 : index
    %76 = vector.load %arg11[%c0_79, %c0_80] : memref<64x48xf32, #tpu.memory_space<vmem>>, vector<64x48xf32>
    %cst_81 = arith.constant dense<0.000000e+00> : vector<8x48xf32>
    %77 = tpu.matmul %75, %76, %cst_81 {dimension_numbers = #tpu.dot_dimension_numbers<[1], [0], [0], [1], [0, 0, 1, 1], [], []>} : vector<8x64xf32>, vector<64x48xf32>, vector<8x48xf32> -> vector<8x48xf32>
    %c0_82 = arith.constant 0 : index
    %c0_83 = arith.constant 0 : index
    %78 = vector.load %arg12[%c0_82, %c0_83] : memref<1x48xf32, #tpu.memory_space<vmem>>, vector<1x48xf32>
    %79 = vector.broadcast %78 : vector<1x48xf32> to vector<8x48xf32>
    %80 = arith.addf %77, %79 : vector<8x48xf32>
    %cst_84 = arith.constant 0.000000e+00 : f32
    %81 = vector.broadcast %cst_84 : f32 to vector<2x16xf32>
    %82 = vector.extract_strided_slice %80 {offsets = [0, 0], sizes = [2, 48], strides = [1, 1]} : vector<8x48xf32> to vector<2x48xf32>
    %c0_85 = arith.constant 0 : index
    %c0_86 = arith.constant 0 : index
    %83 = vector.load %arg13[%c0_85, %c0_86] : memref<16x48xf32, #tpu.memory_space<vmem>>, vector<16x48xf32>
    %cst_87 = arith.constant dense<0.000000e+00> : vector<2x48xf32>
    %84 = tpu.matmul %81, %83, %cst_87 {dimension_numbers = #tpu.dot_dimension_numbers<[1], [0], [0], [1], [0, 0, 1, 1], [], []>} : vector<2x16xf32>, vector<16x48xf32>, vector<2x48xf32> -> vector<2x48xf32>
    %c0_88 = arith.constant 0 : index
    %c0_89 = arith.constant 0 : index
    %85 = vector.load %arg14[%c0_88, %c0_89] : memref<1x48xf32, #tpu.memory_space<vmem>>, vector<1x48xf32>
    %86 = vector.broadcast %85 : vector<1x48xf32> to vector<2x48xf32>
    %87 = arith.addf %84, %86 : vector<2x48xf32>
    %88 = vector.extract_strided_slice %82 {offsets = [0, 0], sizes = [2, 16], strides = [1, 1]} : vector<2x48xf32> to vector<2x16xf32>
    %89 = vector.extract_strided_slice %87 {offsets = [0, 0], sizes = [2, 16], strides = [1, 1]} : vector<2x48xf32> to vector<2x16xf32>
    %90 = arith.addf %88, %89 : vector<2x16xf32>
    %cst_90 = arith.constant 0.000000e+00 : f32
    %91 = vector.broadcast %cst_90 : f32 to vector<2x16xf32>
    %92 = arith.subf %91, %90 : vector<2x16xf32>
    %93 = math.exp %92 : vector<2x16xf32>
    %cst_91 = arith.constant 1.000000e+00 : f32
    %94 = vector.broadcast %cst_91 : f32 to vector<2x16xf32>
    %95 = arith.addf %94, %93 : vector<2x16xf32>
    %cst_92 = arith.constant 1.000000e+00 : f32
    %96 = vector.broadcast %cst_92 : f32 to vector<2x16xf32>
    %97 = arith.divf %96, %95 : vector<2x16xf32>
    %98 = vector.extract_strided_slice %82 {offsets = [0, 16], sizes = [2, 16], strides = [1, 1]} : vector<2x48xf32> to vector<2x16xf32>
    %99 = vector.extract_strided_slice %87 {offsets = [0, 16], sizes = [2, 16], strides = [1, 1]} : vector<2x48xf32> to vector<2x16xf32>
    %100 = arith.addf %98, %99 : vector<2x16xf32>
    %cst_93 = arith.constant 0.000000e+00 : f32
    %101 = vector.broadcast %cst_93 : f32 to vector<2x16xf32>
    %102 = arith.subf %101, %100 : vector<2x16xf32>
    %103 = math.exp %102 : vector<2x16xf32>
    %cst_94 = arith.constant 1.000000e+00 : f32
    %104 = vector.broadcast %cst_94 : f32 to vector<2x16xf32>
    %105 = arith.addf %104, %103 : vector<2x16xf32>
    %cst_95 = arith.constant 1.000000e+00 : f32
    %106 = vector.broadcast %cst_95 : f32 to vector<2x16xf32>
    %107 = arith.divf %106, %105 : vector<2x16xf32>
    %108 = vector.extract_strided_slice %82 {offsets = [0, 32], sizes = [2, 16], strides = [1, 1]} : vector<2x48xf32> to vector<2x16xf32>
    %109 = vector.extract_strided_slice %87 {offsets = [0, 32], sizes = [2, 16], strides = [1, 1]} : vector<2x48xf32> to vector<2x16xf32>
    %110 = arith.mulf %97, %109 : vector<2x16xf32>
    %111 = arith.addf %108, %110 : vector<2x16xf32>
    %112 = math.tanh %111 : vector<2x16xf32>
    %cst_96 = arith.constant 1.000000e+00 : f32
    %113 = vector.broadcast %cst_96 : f32 to vector<2x16xf32>
    %114 = arith.subf %113, %107 : vector<2x16xf32>
    %115 = arith.mulf %114, %112 : vector<2x16xf32>
    %116 = arith.mulf %107, %81 : vector<2x16xf32>
    %117 = arith.addf %115, %116 : vector<2x16xf32>
    %118 = vector.extract_strided_slice %80 {offsets = [2, 0], sizes = [2, 48], strides = [1, 1]} : vector<8x48xf32> to vector<2x48xf32>
    %c0_97 = arith.constant 0 : index
    %c0_98 = arith.constant 0 : index
    %119 = vector.load %arg13[%c0_97, %c0_98] : memref<16x48xf32, #tpu.memory_space<vmem>>, vector<16x48xf32>
    %cst_99 = arith.constant dense<0.000000e+00> : vector<2x48xf32>
    %120 = tpu.matmul %117, %119, %cst_99 {dimension_numbers = #tpu.dot_dimension_numbers<[1], [0], [0], [1], [0, 0, 1, 1], [], []>} : vector<2x16xf32>, vector<16x48xf32>, vector<2x48xf32> -> vector<2x48xf32>
    %c0_100 = arith.constant 0 : index
    %c0_101 = arith.constant 0 : index
    %121 = vector.load %arg14[%c0_100, %c0_101] : memref<1x48xf32, #tpu.memory_space<vmem>>, vector<1x48xf32>
    %122 = vector.broadcast %121 : vector<1x48xf32> to vector<2x48xf32>
    %123 = arith.addf %120, %122 : vector<2x48xf32>
    %124 = vector.extract_strided_slice %118 {offsets = [0, 0], sizes = [2, 16], strides = [1, 1]} : vector<2x48xf32> to vector<2x16xf32>
    %125 = vector.extract_strided_slice %123 {offsets = [0, 0], sizes = [2, 16], strides = [1, 1]} : vector<2x48xf32> to vector<2x16xf32>
    %126 = arith.addf %124, %125 : vector<2x16xf32>
    %cst_102 = arith.constant 0.000000e+00 : f32
    %127 = vector.broadcast %cst_102 : f32 to vector<2x16xf32>
    %128 = arith.subf %127, %126 : vector<2x16xf32>
    %129 = math.exp %128 : vector<2x16xf32>
    %cst_103 = arith.constant 1.000000e+00 : f32
    %130 = vector.broadcast %cst_103 : f32 to vector<2x16xf32>
    %131 = arith.addf %130, %129 : vector<2x16xf32>
    %cst_104 = arith.constant 1.000000e+00 : f32
    %132 = vector.broadcast %cst_104 : f32 to vector<2x16xf32>
    %133 = arith.divf %132, %131 : vector<2x16xf32>
    %134 = vector.extract_strided_slice %118 {offsets = [0, 16], sizes = [2, 16], strides = [1, 1]} : vector<2x48xf32> to vector<2x16xf32>
    %135 = vector.extract_strided_slice %123 {offsets = [0, 16], sizes = [2, 16], strides = [1, 1]} : vector<2x48xf32> to vector<2x16xf32>
    %136 = arith.addf %134, %135 : vector<2x16xf32>
    %cst_105 = arith.constant 0.000000e+00 : f32
    %137 = vector.broadcast %cst_105 : f32 to vector<2x16xf32>
    %138 = arith.subf %137, %136 : vector<2x16xf32>
    %139 = math.exp %138 : vector<2x16xf32>
    %cst_106 = arith.constant 1.000000e+00 : f32
    %140 = vector.broadcast %cst_106 : f32 to vector<2x16xf32>
    %141 = arith.addf %140, %139 : vector<2x16xf32>
    %cst_107 = arith.constant 1.000000e+00 : f32
    %142 = vector.broadcast %cst_107 : f32 to vector<2x16xf32>
    %143 = arith.divf %142, %141 : vector<2x16xf32>
    %144 = vector.extract_strided_slice %118 {offsets = [0, 32], sizes = [2, 16], strides = [1, 1]} : vector<2x48xf32> to vector<2x16xf32>
    %145 = vector.extract_strided_slice %123 {offsets = [0, 32], sizes = [2, 16], strides = [1, 1]} : vector<2x48xf32> to vector<2x16xf32>
    %146 = arith.mulf %133, %145 : vector<2x16xf32>
    %147 = arith.addf %144, %146 : vector<2x16xf32>
    %148 = math.tanh %147 : vector<2x16xf32>
    %cst_108 = arith.constant 1.000000e+00 : f32
    %149 = vector.broadcast %cst_108 : f32 to vector<2x16xf32>
    %150 = arith.subf %149, %143 : vector<2x16xf32>
    %151 = arith.mulf %150, %148 : vector<2x16xf32>
    %152 = arith.mulf %143, %117 : vector<2x16xf32>
    %153 = arith.addf %151, %152 : vector<2x16xf32>
    %154 = vector.extract_strided_slice %80 {offsets = [4, 0], sizes = [2, 48], strides = [1, 1]} : vector<8x48xf32> to vector<2x48xf32>
    %c0_109 = arith.constant 0 : index
    %c0_110 = arith.constant 0 : index
    %155 = vector.load %arg13[%c0_109, %c0_110] : memref<16x48xf32, #tpu.memory_space<vmem>>, vector<16x48xf32>
    %cst_111 = arith.constant dense<0.000000e+00> : vector<2x48xf32>
    %156 = tpu.matmul %153, %155, %cst_111 {dimension_numbers = #tpu.dot_dimension_numbers<[1], [0], [0], [1], [0, 0, 1, 1], [], []>} : vector<2x16xf32>, vector<16x48xf32>, vector<2x48xf32> -> vector<2x48xf32>
    %c0_112 = arith.constant 0 : index
    %c0_113 = arith.constant 0 : index
    %157 = vector.load %arg14[%c0_112, %c0_113] : memref<1x48xf32, #tpu.memory_space<vmem>>, vector<1x48xf32>
    %158 = vector.broadcast %157 : vector<1x48xf32> to vector<2x48xf32>
    %159 = arith.addf %156, %158 : vector<2x48xf32>
    %160 = vector.extract_strided_slice %154 {offsets = [0, 0], sizes = [2, 16], strides = [1, 1]} : vector<2x48xf32> to vector<2x16xf32>
    %161 = vector.extract_strided_slice %159 {offsets = [0, 0], sizes = [2, 16], strides = [1, 1]} : vector<2x48xf32> to vector<2x16xf32>
    %162 = arith.addf %160, %161 : vector<2x16xf32>
    %cst_114 = arith.constant 0.000000e+00 : f32
    %163 = vector.broadcast %cst_114 : f32 to vector<2x16xf32>
    %164 = arith.subf %163, %162 : vector<2x16xf32>
    %165 = math.exp %164 : vector<2x16xf32>
    %cst_115 = arith.constant 1.000000e+00 : f32
    %166 = vector.broadcast %cst_115 : f32 to vector<2x16xf32>
    %167 = arith.addf %166, %165 : vector<2x16xf32>
    %cst_116 = arith.constant 1.000000e+00 : f32
    %168 = vector.broadcast %cst_116 : f32 to vector<2x16xf32>
    %169 = arith.divf %168, %167 : vector<2x16xf32>
    %170 = vector.extract_strided_slice %154 {offsets = [0, 16], sizes = [2, 16], strides = [1, 1]} : vector<2x48xf32> to vector<2x16xf32>
    %171 = vector.extract_strided_slice %159 {offsets = [0, 16], sizes = [2, 16], strides = [1, 1]} : vector<2x48xf32> to vector<2x16xf32>
    %172 = arith.addf %170, %171 : vector<2x16xf32>
    %cst_117 = arith.constant 0.000000e+00 : f32
    %173 = vector.broadcast %cst_117 : f32 to vector<2x16xf32>
    %174 = arith.subf %173, %172 : vector<2x16xf32>
    %175 = math.exp %174 : vector<2x16xf32>
    %cst_118 = arith.constant 1.000000e+00 : f32
    %176 = vector.broadcast %cst_118 : f32 to vector<2x16xf32>
    %177 = arith.addf %176, %175 : vector<2x16xf32>
    %cst_119 = arith.constant 1.000000e+00 : f32
    %178 = vector.broadcast %cst_119 : f32 to vector<2x16xf32>
    %179 = arith.divf %178, %177 : vector<2x16xf32>
    %180 = vector.extract_strided_slice %154 {offsets = [0, 32], sizes = [2, 16], strides = [1, 1]} : vector<2x48xf32> to vector<2x16xf32>
    %181 = vector.extract_strided_slice %159 {offsets = [0, 32], sizes = [2, 16], strides = [1, 1]} : vector<2x48xf32> to vector<2x16xf32>
    %182 = arith.mulf %169, %181 : vector<2x16xf32>
    %183 = arith.addf %180, %182 : vector<2x16xf32>
    %184 = math.tanh %183 : vector<2x16xf32>
    %cst_120 = arith.constant 1.000000e+00 : f32
    %185 = vector.broadcast %cst_120 : f32 to vector<2x16xf32>
    %186 = arith.subf %185, %179 : vector<2x16xf32>
    %187 = arith.mulf %186, %184 : vector<2x16xf32>
    %188 = arith.mulf %179, %153 : vector<2x16xf32>
    %189 = arith.addf %187, %188 : vector<2x16xf32>
    %190 = vector.extract_strided_slice %80 {offsets = [6, 0], sizes = [2, 48], strides = [1, 1]} : vector<8x48xf32> to vector<2x48xf32>
    %c0_121 = arith.constant 0 : index
    %c0_122 = arith.constant 0 : index
    %191 = vector.load %arg13[%c0_121, %c0_122] : memref<16x48xf32, #tpu.memory_space<vmem>>, vector<16x48xf32>
    %cst_123 = arith.constant dense<0.000000e+00> : vector<2x48xf32>
    %192 = tpu.matmul %189, %191, %cst_123 {dimension_numbers = #tpu.dot_dimension_numbers<[1], [0], [0], [1], [0, 0, 1, 1], [], []>} : vector<2x16xf32>, vector<16x48xf32>, vector<2x48xf32> -> vector<2x48xf32>
    %c0_124 = arith.constant 0 : index
    %c0_125 = arith.constant 0 : index
    %193 = vector.load %arg14[%c0_124, %c0_125] : memref<1x48xf32, #tpu.memory_space<vmem>>, vector<1x48xf32>
    %194 = vector.broadcast %193 : vector<1x48xf32> to vector<2x48xf32>
    %195 = arith.addf %192, %194 : vector<2x48xf32>
    %196 = vector.extract_strided_slice %190 {offsets = [0, 0], sizes = [2, 16], strides = [1, 1]} : vector<2x48xf32> to vector<2x16xf32>
    %197 = vector.extract_strided_slice %195 {offsets = [0, 0], sizes = [2, 16], strides = [1, 1]} : vector<2x48xf32> to vector<2x16xf32>
    %198 = arith.addf %196, %197 : vector<2x16xf32>
    %cst_126 = arith.constant 0.000000e+00 : f32
    %199 = vector.broadcast %cst_126 : f32 to vector<2x16xf32>
    %200 = arith.subf %199, %198 : vector<2x16xf32>
    %201 = math.exp %200 : vector<2x16xf32>
    %cst_127 = arith.constant 1.000000e+00 : f32
    %202 = vector.broadcast %cst_127 : f32 to vector<2x16xf32>
    %203 = arith.addf %202, %201 : vector<2x16xf32>
    %cst_128 = arith.constant 1.000000e+00 : f32
    %204 = vector.broadcast %cst_128 : f32 to vector<2x16xf32>
    %205 = arith.divf %204, %203 : vector<2x16xf32>
    %206 = vector.extract_strided_slice %190 {offsets = [0, 16], sizes = [2, 16], strides = [1, 1]} : vector<2x48xf32> to vector<2x16xf32>
    %207 = vector.extract_strided_slice %195 {offsets = [0, 16], sizes = [2, 16], strides = [1, 1]} : vector<2x48xf32> to vector<2x16xf32>
    %208 = arith.addf %206, %207 : vector<2x16xf32>
    %cst_129 = arith.constant 0.000000e+00 : f32
    %209 = vector.broadcast %cst_129 : f32 to vector<2x16xf32>
    %210 = arith.subf %209, %208 : vector<2x16xf32>
    %211 = math.exp %210 : vector<2x16xf32>
    %cst_130 = arith.constant 1.000000e+00 : f32
    %212 = vector.broadcast %cst_130 : f32 to vector<2x16xf32>
    %213 = arith.addf %212, %211 : vector<2x16xf32>
    %cst_131 = arith.constant 1.000000e+00 : f32
    %214 = vector.broadcast %cst_131 : f32 to vector<2x16xf32>
    %215 = arith.divf %214, %213 : vector<2x16xf32>
    %216 = vector.extract_strided_slice %190 {offsets = [0, 32], sizes = [2, 16], strides = [1, 1]} : vector<2x48xf32> to vector<2x16xf32>
    %217 = vector.extract_strided_slice %195 {offsets = [0, 32], sizes = [2, 16], strides = [1, 1]} : vector<2x48xf32> to vector<2x16xf32>
    %218 = arith.mulf %205, %217 : vector<2x16xf32>
    %219 = arith.addf %216, %218 : vector<2x16xf32>
    %220 = math.tanh %219 : vector<2x16xf32>
    %cst_132 = arith.constant 1.000000e+00 : f32
    %221 = vector.broadcast %cst_132 : f32 to vector<2x16xf32>
    %222 = arith.subf %221, %215 : vector<2x16xf32>
    %223 = arith.mulf %222, %220 : vector<2x16xf32>
    %224 = arith.mulf %215, %189 : vector<2x16xf32>
    %225 = arith.addf %223, %224 : vector<2x16xf32>
    %c0_133 = arith.constant 0 : index
    %c0_134 = arith.constant 0 : index
    %226 = vector.load %arg15[%c0_133, %c0_134] : memref<16x32xf32, #tpu.memory_space<vmem>>, vector<16x32xf32>
    %cst_135 = arith.constant dense<0.000000e+00> : vector<2x32xf32>
    %227 = tpu.matmul %225, %226, %cst_135 {dimension_numbers = #tpu.dot_dimension_numbers<[1], [0], [0], [1], [0, 0, 1, 1], [], []>} : vector<2x16xf32>, vector<16x32xf32>, vector<2x32xf32> -> vector<2x32xf32>
    %c0_136 = arith.constant 0 : index
    %c0_137 = arith.constant 0 : index
    %228 = vector.load %arg16[%c0_136, %c0_137] : memref<8x8xf32, #tpu.memory_space<vmem>>, vector<8x8xf32>
    %229 = math.tanh %228 : vector<8x8xf32>
    %c0_138 = arith.constant 0 : index
    %c0_139 = arith.constant 0 : index
    %230 = vector.load %arg17[%c0_138, %c0_139] : memref<8x32xf32, #tpu.memory_space<vmem>>, vector<8x32xf32>
    %cst_140 = arith.constant dense<0.000000e+00> : vector<8x32xf32>
    %231 = tpu.matmul %229, %230, %cst_140 {dimension_numbers = #tpu.dot_dimension_numbers<[1], [0], [0], [1], [0, 0, 1, 1], [], []>} : vector<8x8xf32>, vector<8x32xf32>, vector<8x32xf32> -> vector<8x32xf32>
    %c0_141 = arith.constant 0 : index
    %c0_142 = arith.constant 0 : index
    %232 = vector.load %arg18[%c0_141, %c0_142] : memref<8x32xf32, #tpu.memory_space<vmem>>, vector<8x32xf32>
    %cst_143 = arith.constant dense<0.000000e+00> : vector<8x32xf32>
    %233 = tpu.matmul %229, %232, %cst_143 {dimension_numbers = #tpu.dot_dimension_numbers<[1], [0], [0], [1], [0, 0, 1, 1], [], []>} : vector<8x8xf32>, vector<8x32xf32>, vector<8x32xf32> -> vector<8x32xf32>
    %234 = vector.extract_strided_slice %227 {offsets = [0, 0], sizes = [2, 8], strides = [1, 1]} : vector<2x32xf32> to vector<2x8xf32>
    %235 = vector.extract_strided_slice %231 {offsets = [0, 0], sizes = [8, 8], strides = [1, 1]} : vector<8x32xf32> to vector<8x8xf32>
    %cst_144 = arith.constant dense<0.000000e+00> : vector<2x8xf32>
    %236 = tpu.matmul %234, %235, %cst_144 {dimension_numbers = #tpu.dot_dimension_numbers<[1], [1], [0], [0], [0, 0, 1, 0], [], []>} : vector<2x8xf32>, vector<8x8xf32>, vector<2x8xf32> -> vector<2x8xf32>
    %cst_145 = arith.constant 0.353553385 : f32
    %237 = vector.broadcast %cst_145 : f32 to vector<2x8xf32>
    %238 = arith.mulf %236, %237 : vector<2x8xf32>
    %cst_146 = arith.constant dense<0xFF800000> : vector<2xf32>
    %239 = vector.multi_reduction <maximumf>, %238, %cst_146 [1] : vector<2x8xf32> to vector<2xf32>
    %240 = vector.shape_cast %239 : vector<2xf32> to vector<2x1xf32>
    %241 = vector.broadcast %240 : vector<2x1xf32> to vector<2x8xf32>
    %242 = arith.subf %238, %241 : vector<2x8xf32>
    %243 = math.exp %242 : vector<2x8xf32>
    %cst_147 = arith.constant dense<0.000000e+00> : vector<2xf32>
    %244 = vector.multi_reduction <add>, %243, %cst_147 [1] : vector<2x8xf32> to vector<2xf32>
    %245 = vector.shape_cast %244 : vector<2xf32> to vector<2x1xf32>
    %246 = tpu.reciprocal %245 {approx = true} : vector<2x1xf32> -> vector<2x1xf32>
    %247 = vector.broadcast %246 : vector<2x1xf32> to vector<2x8xf32>
    %248 = arith.mulf %243, %247 : vector<2x8xf32>
    %249 = vector.extract_strided_slice %233 {offsets = [0, 0], sizes = [8, 8], strides = [1, 1]} : vector<8x32xf32> to vector<8x8xf32>
    %cst_148 = arith.constant dense<0.000000e+00> : vector<2x8xf32>
    %250 = tpu.matmul %248, %249, %cst_148 {dimension_numbers = #tpu.dot_dimension_numbers<[1], [0], [0], [1], [0, 0, 1, 1], [], []>} : vector<2x8xf32>, vector<8x8xf32>, vector<2x8xf32> -> vector<2x8xf32>
    %251 = vector.extract_strided_slice %227 {offsets = [0, 8], sizes = [2, 8], strides = [1, 1]} : vector<2x32xf32> to vector<2x8xf32>
    %252 = vector.extract_strided_slice %231 {offsets = [0, 8], sizes = [8, 8], strides = [1, 1]} : vector<8x32xf32> to vector<8x8xf32>
    %cst_149 = arith.constant dense<0.000000e+00> : vector<2x8xf32>
    %253 = tpu.matmul %251, %252, %cst_149 {dimension_numbers = #tpu.dot_dimension_numbers<[1], [1], [0], [0], [0, 0, 1, 0], [], []>} : vector<2x8xf32>, vector<8x8xf32>, vector<2x8xf32> -> vector<2x8xf32>
    %cst_150 = arith.constant 0.353553385 : f32
    %254 = vector.broadcast %cst_150 : f32 to vector<2x8xf32>
    %255 = arith.mulf %253, %254 : vector<2x8xf32>
    %cst_151 = arith.constant dense<0xFF800000> : vector<2xf32>
    %256 = vector.multi_reduction <maximumf>, %255, %cst_151 [1] : vector<2x8xf32> to vector<2xf32>
    %257 = vector.shape_cast %256 : vector<2xf32> to vector<2x1xf32>
    %258 = vector.broadcast %257 : vector<2x1xf32> to vector<2x8xf32>
    %259 = arith.subf %255, %258 : vector<2x8xf32>
    %260 = math.exp %259 : vector<2x8xf32>
    %cst_152 = arith.constant dense<0.000000e+00> : vector<2xf32>
    %261 = vector.multi_reduction <add>, %260, %cst_152 [1] : vector<2x8xf32> to vector<2xf32>
    %262 = vector.shape_cast %261 : vector<2xf32> to vector<2x1xf32>
    %263 = tpu.reciprocal %262 {approx = true} : vector<2x1xf32> -> vector<2x1xf32>
    %264 = vector.broadcast %263 : vector<2x1xf32> to vector<2x8xf32>
    %265 = arith.mulf %260, %264 : vector<2x8xf32>
    %266 = vector.extract_strided_slice %233 {offsets = [0, 8], sizes = [8, 8], strides = [1, 1]} : vector<8x32xf32> to vector<8x8xf32>
    %cst_153 = arith.constant dense<0.000000e+00> : vector<2x8xf32>
    %267 = tpu.matmul %265, %266, %cst_153 {dimension_numbers = #tpu.dot_dimension_numbers<[1], [0], [0], [1], [0, 0, 1, 1], [], []>} : vector<2x8xf32>, vector<8x8xf32>, vector<2x8xf32> -> vector<2x8xf32>
    %268 = vector.extract_strided_slice %227 {offsets = [0, 16], sizes = [2, 8], strides = [1, 1]} : vector<2x32xf32> to vector<2x8xf32>
    %269 = vector.extract_strided_slice %231 {offsets = [0, 16], sizes = [8, 8], strides = [1, 1]} : vector<8x32xf32> to vector<8x8xf32>
    %cst_154 = arith.constant dense<0.000000e+00> : vector<2x8xf32>
    %270 = tpu.matmul %268, %269, %cst_154 {dimension_numbers = #tpu.dot_dimension_numbers<[1], [1], [0], [0], [0, 0, 1, 0], [], []>} : vector<2x8xf32>, vector<8x8xf32>, vector<2x8xf32> -> vector<2x8xf32>
    %cst_155 = arith.constant 0.353553385 : f32
    %271 = vector.broadcast %cst_155 : f32 to vector<2x8xf32>
    %272 = arith.mulf %270, %271 : vector<2x8xf32>
    %cst_156 = arith.constant dense<0xFF800000> : vector<2xf32>
    %273 = vector.multi_reduction <maximumf>, %272, %cst_156 [1] : vector<2x8xf32> to vector<2xf32>
    %274 = vector.shape_cast %273 : vector<2xf32> to vector<2x1xf32>
    %275 = vector.broadcast %274 : vector<2x1xf32> to vector<2x8xf32>
    %276 = arith.subf %272, %275 : vector<2x8xf32>
    %277 = math.exp %276 : vector<2x8xf32>
    %cst_157 = arith.constant dense<0.000000e+00> : vector<2xf32>
    %278 = vector.multi_reduction <add>, %277, %cst_157 [1] : vector<2x8xf32> to vector<2xf32>
    %279 = vector.shape_cast %278 : vector<2xf32> to vector<2x1xf32>
    %280 = tpu.reciprocal %279 {approx = true} : vector<2x1xf32> -> vector<2x1xf32>
    %281 = vector.broadcast %280 : vector<2x1xf32> to vector<2x8xf32>
    %282 = arith.mulf %277, %281 : vector<2x8xf32>
    %283 = vector.extract_strided_slice %233 {offsets = [0, 16], sizes = [8, 8], strides = [1, 1]} : vector<8x32xf32> to vector<8x8xf32>
    %cst_158 = arith.constant dense<0.000000e+00> : vector<2x8xf32>
    %284 = tpu.matmul %282, %283, %cst_158 {dimension_numbers = #tpu.dot_dimension_numbers<[1], [0], [0], [1], [0, 0, 1, 1], [], []>} : vector<2x8xf32>, vector<8x8xf32>, vector<2x8xf32> -> vector<2x8xf32>
    %285 = vector.extract_strided_slice %227 {offsets = [0, 24], sizes = [2, 8], strides = [1, 1]} : vector<2x32xf32> to vector<2x8xf32>
    %286 = vector.extract_strided_slice %231 {offsets = [0, 24], sizes = [8, 8], strides = [1, 1]} : vector<8x32xf32> to vector<8x8xf32>
    %cst_159 = arith.constant dense<0.000000e+00> : vector<2x8xf32>
    %287 = tpu.matmul %285, %286, %cst_159 {dimension_numbers = #tpu.dot_dimension_numbers<[1], [1], [0], [0], [0, 0, 1, 0], [], []>} : vector<2x8xf32>, vector<8x8xf32>, vector<2x8xf32> -> vector<2x8xf32>
    %cst_160 = arith.constant 0.353553385 : f32
    %288 = vector.broadcast %cst_160 : f32 to vector<2x8xf32>
    %289 = arith.mulf %287, %288 : vector<2x8xf32>
    %cst_161 = arith.constant dense<0xFF800000> : vector<2xf32>
    %290 = vector.multi_reduction <maximumf>, %289, %cst_161 [1] : vector<2x8xf32> to vector<2xf32>
    %291 = vector.shape_cast %290 : vector<2xf32> to vector<2x1xf32>
    %292 = vector.broadcast %291 : vector<2x1xf32> to vector<2x8xf32>
    %293 = arith.subf %289, %292 : vector<2x8xf32>
    %294 = math.exp %293 : vector<2x8xf32>
    %cst_162 = arith.constant dense<0.000000e+00> : vector<2xf32>
    %295 = vector.multi_reduction <add>, %294, %cst_162 [1] : vector<2x8xf32> to vector<2xf32>
    %296 = vector.shape_cast %295 : vector<2xf32> to vector<2x1xf32>
    %297 = tpu.reciprocal %296 {approx = true} : vector<2x1xf32> -> vector<2x1xf32>
    %298 = vector.broadcast %297 : vector<2x1xf32> to vector<2x8xf32>
    %299 = arith.mulf %294, %298 : vector<2x8xf32>
    %300 = vector.extract_strided_slice %233 {offsets = [0, 24], sizes = [8, 8], strides = [1, 1]} : vector<8x32xf32> to vector<8x8xf32>
    %cst_163 = arith.constant dense<0.000000e+00> : vector<2x8xf32>
    %301 = tpu.matmul %299, %300, %cst_163 {dimension_numbers = #tpu.dot_dimension_numbers<[1], [0], [0], [1], [0, 0, 1, 1], [], []>} : vector<2x8xf32>, vector<8x8xf32>, vector<2x8xf32> -> vector<2x8xf32>
    %302 = tpu.concatenate %250, %267, %284, %301 in 1 : vector<2x8xf32>, vector<2x8xf32>, vector<2x8xf32>, vector<2x8xf32> -> vector<2x32xf32>
    %c0_164 = arith.constant 0 : index
    %c0_165 = arith.constant 0 : index
    %303 = vector.load %arg21[%c0_164, %c0_165] : memref<2x32xf32, #tpu.memory_space<vmem>>, vector<2x32xf32>
    tpu.vector_store %arg21[%c0_164, %c0_165], %302 {strides = array<i32>} : memref<2x32xf32, #tpu.memory_space<vmem>>, vector<2x32xf32>,
    %c0_166 = arith.constant 0 : index
    %c0_167 = arith.constant 0 : index
    %304 = vector.load %arg19[%c0_166, %c0_167] : memref<32x5xf32, #tpu.memory_space<vmem>>, vector<32x5xf32>
    %cst_168 = arith.constant dense<0.000000e+00> : vector<2x5xf32>
    %305 = tpu.matmul %302, %304, %cst_168 {dimension_numbers = #tpu.dot_dimension_numbers<[1], [0], [0], [1], [0, 0, 1, 1], [], []>} : vector<2x32xf32>, vector<32x5xf32>, vector<2x5xf32> -> vector<2x5xf32>
    %c0_169 = arith.constant 0 : index
    %c0_170 = arith.constant 0 : index
    %306 = vector.load %arg20[%c0_169, %c0_170] : memref<1x5xf32, #tpu.memory_space<vmem>>, vector<1x5xf32>
    %307 = vector.broadcast %306 : vector<1x5xf32> to vector<2x5xf32>
    %308 = arith.addf %305, %307 : vector<2x5xf32>
    %cst_171 = arith.constant dense<0xFF800000> : vector<2xf32>
    %309 = vector.multi_reduction <maximumf>, %308, %cst_171 [1] : vector<2x5xf32> to vector<2xf32>
    %310 = vector.shape_cast %309 : vector<2xf32> to vector<2x1xf32>
    %311 = vector.broadcast %310 : vector<2x1xf32> to vector<2x5xf32>
    %312 = arith.subf %308, %311 : vector<2x5xf32>
    %313 = math.exp %312 : vector<2x5xf32>
    %cst_172 = arith.constant dense<0.000000e+00> : vector<2xf32>
    %314 = vector.multi_reduction <add>, %313, %cst_172 [1] : vector<2x5xf32> to vector<2xf32>
    %315 = vector.shape_cast %314 : vector<2xf32> to vector<2x1xf32>
    %316 = tpu.reciprocal %315 {approx = true} : vector<2x1xf32> -> vector<2x1xf32>
    %317 = vector.broadcast %316 : vector<2x1xf32> to vector<2x5xf32>
    %318 = arith.mulf %313, %317 : vector<2x5xf32>
    %c0_173 = arith.constant 0 : index
    %c0_174 = arith.constant 0 : index
    %319 = vector.load %arg22[%c0_173, %c0_174] : memref<2x5xf32, #tpu.memory_space<vmem>>, vector<2x5xf32>
    tpu.vector_store %arg22[%c0_173, %c0_174], %318 {strides = array<i32>} : memref<2x5xf32, #tpu.memory_space<vmem>>, vector<2x5xf32>,
    return
  }
  func.func @transform_0(%arg0: i32) -> (i32, i32) {
    %c0_i32 = arith.constant 0 : i32
    %c0_i32_0 = arith.constant 0 : i32
    %c0_i32_1 = arith.constant 0 : i32
    return %c0_i32, %c0_i32_0 : i32, i32
  }
  func.func @transform_1(%arg0: i32) -> (i32, i32, i32) {
    %c0_i32 = arith.constant 0 : i32
    %c0_i32_0 = arith.constant 0 : i32
    %c0_i32_1 = arith.constant 0 : i32
    %c0_i32_2 = arith.constant 0 : i32
    return %c0_i32, %c0_i32_0, %c0_i32_1 : i32, i32, i32
  }
  func.func @transform_2(%arg0: i32) -> (i32, i32, i32) {
    %c0_i32 = arith.constant 0 : i32
    %c0_i32_0 = arith.constant 0 : i32
    %c0_i32_1 = arith.constant 0 : i32
    %c0_i32_2 = arith.constant 0 : i32
    return %c0_i32, %c0_i32_0, %c0_i32_1 : i32, i32, i32
  }
  func.func @transform_3(%arg0: i32) -> (i32, i32) {
    %c0_i32 = arith.constant 0 : i32
    %c0_i32_0 = arith.constant 0 : i32
    %c0_i32_1 = arith.constant 0 : i32
    return %c0_i32, %c0_i32_0 : i32, i32
  }
  func.func @transform_4(%arg0: i32) -> (i32, i32, i32) {
    %c0_i32 = arith.constant 0 : i32
    %c0_i32_0 = arith.constant 0 : i32
    %c0_i32_1 = arith.constant 0 : i32
    %c0_i32_2 = arith.constant 0 : i32
    return %c0_i32, %c0_i32_0, %c0_i32_1 : i32, i32, i32
  }
  func.func @transform_5(%arg0: i32) -> (i32, i32, i32) {
    %c0_i32 = arith.constant 0 : i32
    %c0_i32_0 = arith.constant 0 : i32
    %c0_i32_1 = arith.constant 0 : i32
    %c0_i32_2 = arith.constant 0 : i32
    return %c0_i32, %c0_i32_0, %c0_i32_1 : i32, i32, i32
  }
  func.func @transform_6(%arg0: i32) -> (i32, i32) {
    %c0_i32 = arith.constant 0 : i32
    %c0_i32_0 = arith.constant 0 : i32
    %c0_i32_1 = arith.constant 0 : i32
    return %c0_i32, %c0_i32_0 : i32, i32
  }
  func.func @transform_7(%arg0: i32) -> (i32, i32, i32) {
    %c0_i32 = arith.constant 0 : i32
    %c0_i32_0 = arith.constant 0 : i32
    %c0_i32_1 = arith.constant 0 : i32
    %c0_i32_2 = arith.constant 0 : i32
    return %c0_i32, %c0_i32_0, %c0_i32_1 : i32, i32, i32
  }
  func.func @transform_8(%arg0: i32) -> (i32, i32, i32) {
    %c0_i32 = arith.constant 0 : i32
    %c0_i32_0 = arith.constant 0 : i32
    %c0_i32_1 = arith.constant 0 : i32
    %c0_i32_2 = arith.constant 0 : i32
    return %c0_i32, %c0_i32_0, %c0_i32_1 : i32, i32, i32
  }
  func.func @transform_9(%arg0: i32) -> (i32, i32) {
    %c0_i32 = arith.constant 0 : i32
    %c0_i32_0 = arith.constant 0 : i32
    %c0_i32_1 = arith.constant 0 : i32
    return %c0_i32, %c0_i32_0 : i32, i32
  }
  func.func @transform_10(%arg0: i32) -> (i32, i32) {
    %c0_i32 = arith.constant 0 : i32
    %c0_i32_0 = arith.constant 0 : i32
    %c0_i32_1 = arith.constant 0 : i32
    return %c0_i32, %c0_i32_0 : i32, i32
  }
  func.func @transform_11(%arg0: i32) -> (i32, i32) {
    %c0_i32 = arith.constant 0 : i32
    %c0_i32_0 = arith.constant 0 : i32
    %c0_i32_1 = arith.constant 0 : i32
    return %c0_i32, %c0_i32_0 : i32, i32
  }
  func.func @transform_12(%arg0: i32) -> (i32, i32) {
    %c0_i32 = arith.constant 0 : i32
    %c0_i32_0 = arith.constant 0 : i32
    %c0_i32_1 = arith.constant 0 : i32
    return %c0_i32, %c0_i32_0 : i32, i32
  }
  func.func @transform_13(%arg0: i32) -> (i32, i32) {
    %c0_i32 = arith.constant 0 : i32
    %c0_i32_0 = arith.constant 0 : i32
    %c0_i32_1 = arith.constant 0 : i32
    return %c0_i32, %c0_i32_0 : i32, i32
  }
  func.func @transform_14(%arg0: i32) -> (i32, i32) {
    %c0_i32 = arith.constant 0 : i32
    %c0_i32_0 = arith.constant 0 : i32
    %c0_i32_1 = arith.constant 0 : i32
    return %c0_i32, %c0_i32_0 : i32, i32
  }
  func.func @transform_15(%arg0: i32) -> (i32, i32) {
    %c0_i32 = arith.constant 0 : i32
    %c0_i32_0 = arith.constant 0 : i32
    %c0_i32_1 = arith.constant 0 : i32
    return %c0_i32, %c0_i32_0 : i32, i32
  }
  func.func @transform_16(%arg0: i32) -> (i32, i32) {
    %c0_i32 = arith.constant 0 : i32
    %c0_i32_0 = arith.constant 0 : i32
    %c0_i32_1 = arith.constant 0 : i32
    return %c0_i32, %c0_i32_0 : i32, i32
  }
  func.func @transform_17(%arg0: i32) -> (i32, i32) {
    %c0_i32 = arith.constant 0 : i32
    %c0_i32_0 = arith.constant 0 : i32
    %c0_i32_1 = arith.constant 0 : i32
    return %c0_i32, %c0_i32_0 : i32, i32
  }
  func.func @transform_18(%arg0: i32) -> (i32, i32) {
    %c0_i32 = arith.constant 0 : i32
    %c0_i32_0 = arith.constant 0 : i32
    %c0_i32_1 = arith.constant 0 : i32
    return %c0_i32, %c0_i32_0 : i32, i32
  }
  func.func @transform_19(%arg0: i32) -> (i32, i32) {
    %c0_i32 = arith.constant 0 : i32
    %c0_i32_0 = arith.constant 0 : i32
    %c0_i32_1 = arith.constant 0 : i32
    return %c0_i32, %c0_i32_0 : i32, i32
  }
  func.func @transform_20(%arg0: i32) -> (i32, i32) {
    %c0_i32 = arith.constant 0 : i32
    %c0_i32_0 = arith.constant 0 : i32
    %c0_i32_1 = arith.constant 0 : i32
    return %c0_i32, %c0_i32_0 : i32, i32
  }
  func.func @transform_21(%arg0: i32) -> (i32, i32) {
    %c0_i32 = arith.constant 0 : i32
    %c0_i32_0 = arith.constant 0 : i32
    %c0_i32_1 = arith.constant 0 : i32
    return %c0_i32, %c0_i32_0 : i32, i32
  }
}

</mosaic_0001>

<bundles_post_ra>
// kernel: _lambda_.1
= control target key start
LH: loop header
LB: loop body
LE: loop exit
PB: predicated region body
PF: predicated region fallthrough
CT: control target
= control target key end

     0   :  { %s5161_s0 = inlined_call_operand.vmem [shape: f32[64,32], index: 0, kind: input, shape index: {}]   ;;  %s5162_s1 = inlined_call_operand.vmem [shape: f32[3,32,64], index: 1, kind: input, shape index: {}]   ;;  %s5163_s2 = inlined_call_operand.hbm [shape: f32[3,32,64], index: 2, kind: input, shape index: {}]   ;;  %s5164_s3 = inlined_call_operand.hbm [shape: f32[1,64], index: 3, kind: input, shape index: {}]   ;;  %s5165_s4 = inlined_call_operand.hbm [shape: f32[3,16,32], index: 4, kind: input, shape index: {}]   ;;  %s5166_s5 = inlined_call_operand.hbm [shape: f32[3,64,64], index: 5, kind: input, shape index: {}]   ;;  %s5167_s6 = inlined_call_operand.hbm [shape: f32[1,64], index: 6, kind: input, shape index: {}]   ;;  %s5168_s7 = inlined_call_operand.hbm [shape: f32[3,8,16], index: 7, kind: input, shape index: {}]   ;;  %s5169_s8 = inlined_call_operand.hbm [shape: f32[3,64,64], index: 8, kind: input, shape index: {}]   ;;  %s5170_s9 = inlined_call_operand.hbm [shape: f32[1,64], index: 9, kind: input, shape index: {}]   ;;  %s5171_s10 = inlined_call_operand.vmem [shape: f32[64,48], index: 10, kind: input, shape index: {}]   ;;  %s5172_s11 = inlined_call_operand.hbm [shape: f32[1,48], index: 11, kind: input, shape index: {}]   ;;  %s5173_s12 = inlined_call_operand.vmem [shape: f32[16,48], index: 12, kind: input, shape index: {}]   ;;  %s5174_s13 = inlined_call_operand.hbm [shape: f32[1,48], index: 13, kind: input, shape index: {}]   ;;  %s5175_s14 = inlined_call_operand.hbm [shape: f32[16,32], index: 14, kind: input, shape index: {}]   ;;  %s5176_s15 = inlined_call_operand.hbm [shape: f32[8,8], index: 15, kind: input, shape index: {}]   ;;  %s5177_s16 = inlined_call_operand.hbm [shape: f32[8,32], index: 16, kind: input, shape index: {}]   ;;  %s5178_s17 = inlined_call_operand.vmem [shape: f32[8,32], index: 17, kind: input, shape index: {}]   ;;  %s5179_s18 = inlined_call_operand.vmem [shape: f32[32,5], index: 18, kind: input, shape index: {}]   ;;  %s5180_s19 = inlined_call_operand.hbm [shape: f32[1,5], index: 19, kind: input, shape index: {}]   ;;  %s5181_s20 = inlined_call_operand.hbm [shape: f32[2,32], index: 20, kind: output, shape index: {0}]   ;;  %s5182_s21 = inlined_call_operand.hbm [shape: f32[2,5], index: 21, kind: output, shape index: {1}]  }
   0x1   :  { %5185 = sst [smem:[#allocation38_spill]] %s5161_s0 }
   0x2   :  { %5186 = sst [smem:[#allocation39_spill]] %s5162_s1 }
   0x3   :  { %5187 = sst [smem:[#allocation40_spill]] %s5163_s2 }
   0x4   :  { %5188 = sst [smem:[#allocation41_spill]] %s5164_s3 }
   0x5   :  { %5189 = sst [smem:[#allocation42_spill]] %s5165_s4 }
   0x6   :  { %5190 = sst [smem:[#allocation43_spill]] %s5166_s5 }
   0x7   :  { %27 = vsyncpa [#allocation3], 0 }
   0x8   :  { %28 = vsyncpa [#allocation6], 0 }
   0x9   :  { %29 = vsyncpa [#allocation9], 0 }
   0xa   :  { %30 = vsyncpa [#allocation12], 0 }
   0xb   :  { %31 = vsyncpa [#allocation15], 0 }
   0xc   :  { %32 = vsyncpa [#allocation18], 0 }
   0xd   :  { %33 = vsyncpa [#allocation21], 0 }
   0xe   :  { %34 = vsyncpa [#allocation24], 0 }
   0xf   :  { %35 = vsyncpa [#allocation4], 0 }
  0x10   :  { %36 = vsyncpa [#allocation27], 0  ;;  %s4519_s2 = smov [#allocation5]  }
  0x11   :  { %s59_s25 = sshll.u32 %s4519_s2, 4  ;;  %s60_s25 = int_to_ptr.vmem [resolvable:$true] %s59_s25 }
  0x12   :  { %s4187_s26 = scalar_lea.vmem %s60_s25, 16  ;;  %s4191_s27 = scalar_lea.vmem %s60_s25, 32 }
  0x13   :  { %p4188_p0 = scmp.ne.s32.totalorder %s60_s25, %s4187_s26  ;;  %p4192_p1 = scmp.lt.s32.totalorder %s60_s25, %s60_s25 }
  0x14   :  { %p4193_p2 = scmp.lt.s32.totalorder %s4191_s27, %s4187_s26 }
  0x16   :  { %p4194_p3 = por %p4193_p2, %p4192_p1 }
  0x18   :  { %p4195_p4 = pnand %p4194_p3, %p4188_p0 }
  0x1a   :  { %4198 = shalt.err (!%p4195_p4)
}
  0x1b   :  { %s5191_s29 = sld [smem:[#allocation41_spill]]  ;;  %s4520_s0 = smov [#allocation8]  }
  0x1c   :  { %s80_s4 = sshll.u32 %s4520_s0, 4  ;;  %s4521_s30 = smov [#allocation11]   ;;  %s81_s4 = int_to_ptr.vmem [resolvable:$true] %s80_s4 }
  0x1d   :  { %s102_s5 = sshll.u32 %s4521_s30, 4  ;;  %s4207_s22 = scalar_lea.vmem %s81_s4, 3072  ;;  %s103_s5 = int_to_ptr.vmem [resolvable:$true] %s102_s5 }
  0x1e   :  { %p4208_p5 = scmp.ne.s32.totalorder %s81_s4, %s4207_s22  ;;  %p4212_p6 = scmp.lt.s32.totalorder %s81_s4, %s81_s4 }
  0x1f   :  { %p4213_p7 = scmp.lt.s32.totalorder %s4207_s22, %s4207_s22 }
  0x21   :  { %62 = dma.hbm_to_vmem [thread:$0]  %s5191_s29, 16, %s60_s25, [#allocation6]  }
  0x22   :  { %p4214_p8 = por %p4213_p7, %p4212_p6 }
  0x24   :  { %p4215_p9 = pnand %p4214_p8, %p4208_p5 }
  0x26   :  { %4218 = shalt.err (!%p4215_p9)
}
  0x27   :  { %s4522_s23 = smov 128   ;;  %s4523_s1 = smov 8  }
  0x28   :  { %s5192_s25 = sld [smem:[#allocation43_spill]]  ;;  %s4227_s26 = scalar_lea.vmem %s103_s5, 384 }
  0x29   :  { %p4228_p10 = scmp.ne.s32.totalorder %s103_s5, %s4227_s26  ;;  %p4232_p11 = scmp.lt.s32.totalorder %s103_s5, %s103_s5 }
  0x2a   :  { %p4233_p12 = scmp.lt.s32.totalorder %s4227_s26, %s4227_s26 }
  0x2c   :  { %p4234_p13 = por %p4233_p12, %p4232_p11 }
  0x2e   :  { %86 = dma.hbm_to_vmem [thread:$0]  %s5192_s25, 3072, %s81_s4, [#allocation9], %s4522_s23, %s4522_s23, %s4523_s1  }
  0x2f   :  { %p4235_p0 = pnand %p4234_p13, %p4228_p10 }
  0x31   :  { %4238 = shalt.err (!%p4235_p0)
}
  0x32   :  { %108 = dma.hbm_to_vmem [thread:$0]  %s5168_s7, 384, %s103_s5, [#allocation12], %s4522_s23, %s4522_s23, %s4523_s1  }
  0x33   :  { %s4524_s28 = smov [#allocation14]   ;;  %s4525_s0 = smov [#allocation17]  }
  0x34   :  { %s127_s29 = sshll.u32 %s4524_s28, 4  ;;  %s151_s4 = sshll.u32 %s4525_s0, 4  ;;  %s128_s29 = int_to_ptr.vmem [resolvable:$true] %s127_s29  ;;  %s152_s4 = int_to_ptr.vmem [resolvable:$true] %s151_s4 }
  0x35   :  { %s4247_s30 = scalar_lea.vmem %s128_s29, 16  ;;  %s4251_s22 = scalar_lea.vmem %s128_s29, 32 }
  0x36   :  { %p4248_p1 = scmp.ne.s32.totalorder %s128_s29, %s4247_s30  ;;  %p4252_p2 = scmp.lt.s32.totalorder %s128_s29, %s128_s29 }
  0x37   :  { %p4253_p3 = scmp.lt.s32.totalorder %s4251_s22, %s4247_s30 }
  0x39   :  { %p4254_p4 = por %p4253_p3, %p4252_p2 }
  0x3b   :  { %p4255_p5 = pnand %p4254_p4, %p4248_p1 }
  0x3d   :  { %4258 = shalt.err (!%p4255_p5)
}
  0x3e   :  { %130 = dma.hbm_to_vmem [thread:$0]  %s5170_s9, 16, %s128_s29, [#allocation15]  }
  0x3f   :  { %s4267_s25 = scalar_lea.vmem %s152_s4, 16  ;;  %s4271_s7 = scalar_lea.vmem %s152_s4, 32 }
  0x40   :  { %p4268_p6 = scmp.ne.s32.totalorder %s152_s4, %s4267_s25  ;;  %p4272_p7 = scmp.lt.s32.totalorder %s152_s4, %s152_s4 }
  0x41   :  { %p4273_p8 = scmp.lt.s32.totalorder %s4271_s7, %s4267_s25 }
  0x43   :  { %p4274_p9 = por %p4273_p8, %p4272_p7 }
  0x45   :  { %p4275_p10 = pnand %p4274_p9, %p4268_p6 }
  0x47   :  { %4278 = shalt.err (!%p4275_p10)
}
  0x48   :  { %154 = dma.hbm_to_vmem [thread:$0]  %s5174_s13, 16, %s152_s4, [#allocation18]  }
  0x49   :  { %s4526_s27 = smov [#allocation20]   ;;  %s4527_s28 = smov [#allocation2]  }
  0x4a   :  { %s173_s3 = sshll.u32 %s4526_s27, 4  ;;  %s46_s0 = sshll.u32 %s4527_s28, 4  ;;  %s174_s3 = int_to_ptr.vmem [resolvable:$true] %s173_s3  ;;  %s47_s0 = int_to_ptr.vmem [resolvable:$true] %s46_s0 }
  0x4b   :  { %s4287_s30 = scalar_lea.vmem %s174_s3, 128  ;;  %p4292_p12 = scmp.lt.s32.totalorder %s174_s3, %s174_s3 }
  0x4c   :  { %p4288_p11 = scmp.ne.s32.totalorder %s174_s3, %s4287_s30  ;;  %p4293_p13 = scmp.lt.s32.totalorder %s4287_s30, %s4287_s30 }
  0x4e   :  { %p4294_p0 = por %p4293_p13, %p4292_p12 }
  0x50   :  { %p4295_p1 = pnand %p4294_p0, %p4288_p11 }
  0x52   :  { %4298 = shalt.err (!%p4295_p1)
}
  0x53   :  { %176 = dma.hbm_to_vmem [thread:$0]  %s5176_s15, 128, %s174_s3, [#allocation21]  }
  0x54   :  { %s4307_s22 = scalar_lea.vmem %s47_s0, 1536  ;;  %p4312_p3 = scmp.lt.s32.totalorder %s47_s0, %s47_s0 }
  0x55   :  { %p4308_p2 = scmp.ne.s32.totalorder %s47_s0, %s4307_s22  ;;  %p4313_p4 = scmp.lt.s32.totalorder %s4307_s22, %s4307_s22 }
  0x57   :  { %p4314_p5 = por %p4313_p4, %p4312_p3 }
  0x59   :  { %p4315_p6 = pnand %p4314_p5, %p4308_p2 }
  0x5b   :  { %4318 = shalt.err (!%p4315_p6)
}
  0x5c   :  { %s5193_s24 = sld [smem:[#allocation40_spill]]  ;;  %s4528_s2 = smov [#allocation7]  }
  0x5d   :  { %s68_s25 = sshll.u32 %s4528_s2, 4  ;;  %s4529_s7 = smov [#allocation10]   ;;  %s69_s25 = int_to_ptr.vmem [resolvable:$true] %s68_s25 }
  0x5e   :  { %s93_s15 = sshll.u32 %s4529_s7, 4  ;;  %s4327_s5 = scalar_lea.vmem %s69_s25, 768  ;;  %s94_s15 = int_to_ptr.vmem [resolvable:$true] %s93_s15 }
  0x5f   :  { %p4328_p7 = scmp.ne.s32.totalorder %s69_s25, %s4327_s5  ;;  %p4332_p8 = scmp.lt.s32.totalorder %s69_s25, %s69_s25 }
  0x60   :  { %p4333_p9 = scmp.lt.s32.totalorder %s4327_s5, %s4327_s5 }
  0x62   :  { %52 = dma.hbm_to_vmem [thread:$0]  %s5193_s24, 1536, %s47_s0, [#allocation3], %s4522_s23, %s4522_s23, %s4523_s1  }
  0x63   :  { %p4334_p10 = por %p4333_p9, %p4332_p8 }
  0x65   :  { %p4335_p11 = pnand %p4334_p10, %p4328_p7 }
  0x67   :  { %4338 = shalt.err (!%p4335_p11)
}
  0x68   :  { %s5194_s3 = sld [smem:[#allocation42_spill]]  ;;  %s4347_s28 = scalar_lea.vmem %s94_s15, 16 }
  0x69   :  { %p4348_p12 = scmp.ne.s32.totalorder %s94_s15, %s4347_s28  ;;  %s4351_s0 = scalar_lea.vmem %s94_s15, 32 }
  0x6a   :  { %p4352_p13 = scmp.lt.s32.totalorder %s94_s15, %s94_s15  ;;  %p4353_p0 = scmp.lt.s32.totalorder %s4351_s0, %s4347_s28 }
  0x6c   :  { %p4354_p1 = por %p4353_p0, %p4352_p13 }
  0x6e   :  { %74 = dma.hbm_to_vmem [thread:$0]  %s5194_s3, 768, %s69_s25, [#allocation6], %s4522_s23, %s4522_s23, %s4523_s1  }
  0x6f   :  { %p4355_p2 = pnand %p4354_p1, %p4348_p12 }
  0x71   :  { %4358 = shalt.err (!%p4355_p2)
}
  0x72   :  { %96 = dma.hbm_to_vmem [thread:$0]  %s5167_s6, 16, %s94_s15, [#allocation9]  }
  0x73   :  { %s4530_s29 = smov [#allocation13]   ;;  %s4531_s13 = smov [#allocation16]  }
  0x74   :  { %s114_s22 = sshll.u32 %s4530_s29, 4  ;;  %s139_s4 = sshll.u32 %s4531_s13, 4  ;;  %s115_s22 = int_to_ptr.vmem [resolvable:$true] %s114_s22  ;;  %s140_s4 = int_to_ptr.vmem [resolvable:$true] %s139_s4 }
  0x75   :  { %s4367_s24 = scalar_lea.vmem %s115_s22, 3072  ;;  %p4372_p4 = scmp.lt.s32.totalorder %s115_s22, %s115_s22 }
  0x76   :  { %p4368_p3 = scmp.ne.s32.totalorder %s115_s22, %s4367_s24  ;;  %p4373_p5 = scmp.lt.s32.totalorder %s4367_s24, %s4367_s24 }
  0x78   :  { %p4374_p6 = por %p4373_p5, %p4372_p4 }
  0x7a   :  { %p4375_p7 = pnand %p4374_p6, %p4368_p3 }
  0x7c   :  { %4378 = shalt.err (!%p4375_p7)
}
  0x7d   :  { %120 = dma.hbm_to_vmem [thread:$0]  %s5169_s8, 3072, %s115_s22, [#allocation12], %s4522_s23, %s4522_s23, %s4523_s1  }
  0x7e   :  { %s4387_s6 = scalar_lea.vmem %s140_s4, 16  ;;  %s4391_s7 = scalar_lea.vmem %s140_s4, 32 }
  0x7f   :  { %p4388_p8 = scmp.ne.s32.totalorder %s140_s4, %s4387_s6  ;;  %p4392_p9 = scmp.lt.s32.totalorder %s140_s4, %s140_s4 }
  0x80   :  { %p4393_p10 = scmp.lt.s32.totalorder %s4391_s7, %s4387_s6 }
  0x82   :  { %p4394_p11 = por %p4393_p10, %p4392_p9 }
  0x84   :  { %p4395_p12 = pnand %p4394_p11, %p4388_p8 }
  0x86   :  { %4398 = shalt.err (!%p4395_p12)
}
  0x87   :  { %142 = dma.hbm_to_vmem [thread:$0]  %s5172_s11, 16, %s140_s4, [#allocation15]  }
  0x88   :  { %s4532_s26 = smov [#allocation19]   ;;  %s4533_s3 = smov [#allocation22]  }
  0x89   :  { %s160_s27 = sshll.u32 %s4532_s26, 4  ;;  %s183_s28 = sshll.u32 %s4533_s3, 4  ;;  %s161_s27 = int_to_ptr.vmem [resolvable:$true] %s160_s27  ;;  %s184_s28 = int_to_ptr.vmem [resolvable:$true] %s183_s28 }
  0x8a   :  { %s4407_s0 = scalar_lea.vmem %s161_s27, 256  ;;  %p4412_p0 = scmp.lt.s32.totalorder %s161_s27, %s161_s27 }
  0x8b   :  { %p4408_p13 = scmp.ne.s32.totalorder %s161_s27, %s4407_s0  ;;  %p4413_p1 = scmp.lt.s32.totalorder %s4407_s0, %s4407_s0 }
  0x8d   :  { %p4414_p2 = por %p4413_p1, %p4412_p0 }
  0x8f   :  { %p4415_p3 = pnand %p4414_p2, %p4408_p13 }
  0x91   :  { %4418 = shalt.err (!%p4415_p3)
}
  0x92   :  { %166 = dma.hbm_to_vmem [thread:$0]  %s5175_s14, 256, %s161_s27, [#allocation18], %s4522_s23, %s4522_s23, %s4523_s1  }
  0x93   :  { %s4427_s11 = scalar_lea.vmem %s184_s28, 128  ;;  %p4432_p5 = scmp.lt.s32.totalorder %s184_s28, %s184_s28 }
  0x94   :  { %p4428_p4 = scmp.ne.s32.totalorder %s184_s28, %s4427_s11  ;;  %p4433_p6 = scmp.lt.s32.totalorder %s4427_s11, %s4427_s11 }
  0x96   :  { %p4434_p7 = por %p4433_p6, %p4432_p5 }
  0x98   :  { %p4435_p8 = pnand %p4434_p7, %p4428_p4 }
  0x9a   :  { %4438 = shalt.err (!%p4435_p8)
}
  0x9b   :  { %186 = dma.hbm_to_vmem [thread:$0]  %s5177_s16, 128, %s184_s28, [#allocation21]  }
  0x9c   :  { %s4534_s22 = smov [#allocation23]  }
  0x9d   :  { %s197_s13 = sshll.u32 %s4534_s22, 4  ;;  %s198_s13 = int_to_ptr.vmem [resolvable:$true] %s197_s13 }
  0x9e   :  { %s4447_s4 = scalar_lea.vmem %s198_s13, 16  ;;  %s4451_s24 = scalar_lea.vmem %s198_s13, 32 }
  0x9f   :  { %p4448_p9 = scmp.ne.s32.totalorder %s198_s13, %s4447_s4  ;;  %p4452_p10 = scmp.lt.s32.totalorder %s198_s13, %s198_s13 }
  0xa0   :  { %p4453_p11 = scmp.lt.s32.totalorder %s4451_s24, %s4447_s4 }
  0xa2   :  { %p4454_p12 = por %p4453_p11, %p4452_p10 }
  0xa4   :  { %p4455_p13 = pnand %p4454_p12, %p4448_p9 }
  0xa6   :  { %4458 = shalt.err (!%p4455_p13)
}
  0xa7   :  { %200 = dma.hbm_to_vmem [thread:$0]  %s5180_s19, 16, %s198_s13, [#allocation24]  }
  0xa8   :  { %4499 = dma.done.wait [#allocation3], 1536  }
  0xa9   :  { %4500 = vsyncadd [#allocation3], 4294965760 }
  0xaa   :  { %4501 = dma.done.wait [#allocation6], 784  }
  0xab   :  { %4502 = vsyncadd [#allocation6], 4294966512 }
  0xac   :  { %4503 = dma.done.wait [#allocation9], 3088  }
  0xad   :  { %4504 = vsyncadd [#allocation9], 4294964208 }
  0xae   :  { %4505 = dma.done.wait [#allocation12], 3456  }
  0xaf   :  { %4506 = vsyncadd [#allocation12], 4294963840 }
  0xb0   :  { %4507 = dma.done.wait [#allocation15], 32  }
  0xb1   :  { %4508 = vsyncadd [#allocation15], 4294967264 }
  0xb2   :  { %4509 = dma.done.wait [#allocation18], 272  }
  0xb3   :  { %4510 = vsyncadd [#allocation18], 4294967024 }
  0xb4   :  { %4511 = dma.done.wait [#allocation21], 256  }
  0xb5   :  { %4512 = vsyncadd [#allocation21], 4294967040 }
  0xb6   :  { %4513 = dma.done.wait [#allocation24], 16  }
  0xb7   :  { %4514 = vsyncadd [#allocation24], 4294967280  ;;  %s5195_s25 = sld [smem:[#allocation38_spill]]  ;;  %vm255_vm0 = vcmask 523264   ;;  %v463_v14 = vld [vmem:[#allocation2 + $0x38] sm:$0xff]  ;;  %v462_v18 = vld [vmem:[#allocation2 + $0x30] sm:$0xff] }
  0xb8   :  { %s5196_s13 = sld [smem:[#allocation39_spill]]  ;;  %v356_v15 = vld [vmem:[#allocation2 + $0x18] sm:$0xff]  ;;  %v355_v19 = vld [vmem:[#allocation2 + $0x10] sm:$0xff]  ;;  %v461_v20 = vld [vmem:[#allocation2 + $0x28] sm:$0xff]  ;;  %vm464_vm1 = vcmask 261120   ;;  %vm4536_vm2 = vmmov 0  }
  0xb9   :  { %v354_v21 = vld [vmem:[#allocation2 + $0x8] sm:$0xff]  ;;  %v460_v22 = vld [vmem:[#allocation2 + $0x20] sm:$0xff]  ;;  %v765_v36 = vld [vmem:[#allocation2 + $0x58] sm:$0xff]  ;;  %vm1416_vm3 = vcmask 130048   ;;  %s4538_s8 = smov 32   ;;  %s4539_s30 = smov 112  }
  0xba   :  { %v353_v23 = vld [vmem:[#allocation2] sm:$0xff]  ;;  %v764_v37 = vld [vmem:[#allocation2 + $0x50] sm:$0xff]  ;;  %v763_v38 = vld [vmem:[#allocation2 + $0x48] sm:$0xff]  ;;  %vm2489_vm4 = vcmask 64512   ;;  %s4540_s11 = smov 120   ;;  %s4541_s9 = smov 104  }
  0xbb   :  { %v762_v39 = vld [vmem:[#allocation2 + $0x40] sm:$0xff]  ;;  %v974_v49 = vld [vmem:[#allocation7 + $0x10] sm:$0xff]  ;;  %vm2711_vm5 = vcmask 58368   ;;  %s4543_s19 = smov 24   ;;  %vm3309_vm6 = vcmask 195584   ;;  %vm3311_vm7 = vcmask 254976  }
  0xbc   :  { %v882_v48 = vld [vmem:[#allocation7] sm:$0xff]  ;;  %v3478_v63 = vld [vmem:[#allocation5] ss:$0 sm:$0xff]  ;;  %vm3397_vm8 = vcmask 33792  }
  0xbd   :  { %v4719_v0 = vld [vmem:[%s5195_s25 + $0x38] sm:$0xff]  ;;  %v4724_v1 = vld [vmem:[%s5195_s25 + $0x30] sm:$0xff]  ;;  %v4733_v2 = vld [vmem:[%s5195_s25 + $0x28] sm:$0xff] }
  0xbe   :  { %3715 = vmatprep.subr.mxu0 %v4719_v0  ;;  %3737 = vmatprep.subr.mxu1 %v4719_v0  ;;  %v4742_v3 = vld [vmem:[%s5195_s25 + $0x20] sm:$0xff]  ;;  %v4751_v4 = vld [vmem:[%s5195_s25 + $0x18] sm:$0xff]  ;;  %v4760_v5 = vld [vmem:[%s5195_s25 + $0x10] sm:$0xff] }
  0xbf   :  { %3716 = vmatpush3.msra.mxu0 %v4719_v0  ;;  %3738 = vmatpush3.msra.mxu1 %v4719_v0  ;;  %v4769_v6 = vld [vmem:[%s5195_s25 + $0x8] sm:$0xff]  ;;  %v4778_v7 = vld [vmem:[%s5195_s25] sm:$0xff]  ;;  %v253_v12 = vld [vmem:[%s5196_s13 + $0x10] sm:$0xff]  ;;  %s4542_s25 = smov 16  }
  0xc0   :  { %3717 = vmatprep.subr.mxu0 %v4724_v1  ;;  %3739 = vmatprep.subr.mxu1 %v4724_v1  ;;  %v251_v8 = vld [vmem:[%s5196_s13] sm:$0xff]  ;;  %v252_v10 = vld [vmem:[%s5196_s13 + $0x8] sm:$0xff]  ;;  %v3452_v13 = vld [vmem:[%s5196_s13 + $0x30] sm:$0xff] }
  0xc1   :  { %3718 = vmatpush3.msra.mxu0 %v4724_v1  ;;  %3740 = vmatpush3.msra.mxu1 %v4724_v1  ;;  %v3450_v9 = vld [vmem:[%s5196_s13 + $0x20] sm:$0xff]  ;;  %v3451_v11 = vld [vmem:[%s5196_s13 + $0x28] sm:$0xff]  ;;  %v254_v16 = vld [vmem:[%s5196_s13 + $0x18] sm:$0xff] }
  0xc2   :  { %3719 = vmatprep.subr.mxu0 %v4733_v2  ;;  %3741 = vmatprep.subr.mxu1 %v4733_v2  ;;  %v3453_v17 = vld [vmem:[%s5196_s13 + $0x38] sm:$0xff]  ;;  %v3466_v32 = vld [vmem:[%s5196_s13 + $0x40] sm:$0xff]  ;;  %v3467_v33 = vld [vmem:[%s5196_s13 + $0x48] sm:$0xff] }
  0xc3   :  { %3720 = vmatpush3.msra.mxu0 %v4733_v2  ;;  %3742 = vmatpush3.msra.mxu1 %v4733_v2  ;;  %v3468_v34 = vld [vmem:[%s5196_s13 + $0x50] sm:$0xff]  ;;  %v3469_v35 = vld [vmem:[%s5196_s13 + $0x58] sm:$0xff] }
  0xc4   :  { %3721 = vmatprep.subr.mxu0 %v4742_v3  ;;  %3743 = vmatprep.subr.mxu1 %v4742_v3 }
  0xc5   :  { %3722 = vmatpush3.msra.mxu0 %v4742_v3  ;;  %3744 = vmatpush3.msra.mxu1 %v4742_v3 }
  0xc6   :  { %3723 = vmatprep.subr.mxu0 %v4751_v4  ;;  %3745 = vmatprep.subr.mxu1 %v4751_v4 }
  0xc7   :  { %3724 = vmatpush3.msra.mxu0 %v4751_v4  ;;  %3746 = vmatpush3.msra.mxu1 %v4751_v4 }
  0xc8   :  { %3725 = vmatprep.subr.mxu0 %v4760_v5  ;;  %3747 = vmatprep.subr.mxu1 %v4760_v5 }
  0xc9   :  { %3726 = vmatpush3.msra.mxu0 %v4760_v5  ;;  %3748 = vmatpush3.msra.mxu1 %v4760_v5 }
  0xca   :  { %3727 = vmatprep.subr.mxu0 %v4769_v6  ;;  %3749 = vmatprep.subr.mxu1 %v4769_v6 }
  0xcb   :  { %3728 = vmatpush3.msra.mxu0 %v4769_v6  ;;  %3750 = vmatpush3.msra.mxu1 %v4769_v6 }
  0xcc   :  { %3729 = vmatprep.subr.mxu0 %v4778_v7  ;;  %3751 = vmatprep.subr.mxu1 %v4778_v7 }
  0xcd   :  { %3730 = vmatpush3.msra.mxu0 %v4778_v7  ;;  %3731 = vmatprep.mubr.msk.f32.mxu0 %vm255_vm0, %v251_v8 }
  0xce   :  { %3752 = vmatpush3.msra.mxu1 %v4778_v7  ;;  %3753 = vmatprep.mubr.msk.f32.mxu1 %vm255_vm0, %v3450_v9 }
  0xcf   :  { %3732 = vmatmul.mubr.msk.f32.vlgmr.msra.gmra.mxu0 %vm255_vm0, %v252_v10  ;;  %3754 = vmatmul.mubr.msk.f32.vlgmr.msra.gmra.mxu1 %vm255_vm0, %v3451_v11  ;;  %v883_v11 = vld [vmem:[#allocation7 + $0x8] sm:$0xff] }
  0xd0   :  { %3734 = vmatprep.mubr.msk.f32.mxu0 %vm255_vm0, %v253_v12  ;;  %3756 = vmatprep.mubr.msk.f32.mxu1 %vm255_vm0, %v3452_v13  ;;  %v975_v12 = vld [vmem:[#allocation7 + $0x18] sm:$0xff]  ;;  %v1065_v13 = vld [vmem:[#allocation8 + $0x78] sm:$0xff] }
  0xd1   :  { %3759 = vmatprep.subr.mxu0 %v463_v14  ;;  %3773 = vmatprep.subr.mxu1 %v356_v15 }
  0xd2   :  { %3760 = vmatpush3.msra.mxu0 %v463_v14  ;;  %3774 = vmatpush3.msra.mxu1 %v356_v15  ;;  %v972_v14 = vld [vmem:[#allocation8 + $0x38] sm:$0xff]  ;;  %v1064_v15 = vld [vmem:[#allocation8 + $0x70] sm:$0xff] }
  0xd3   :  { %3735 = vmatmul.mubr.msk.f32.gmra.mxu0 %vm255_vm0, %v254_v16  ;;  %3757 = vmatmul.mubr.msk.f32.gmra.mxu1 %vm255_vm0, %v3453_v17  ;;  %v971_v16 = vld [vmem:[#allocation8 + $0x30] sm:$0xff]  ;;  %v1063_v17 = vld [vmem:[#allocation8 + $0x68] sm:$0xff] }
  0xd4   :  { %3761 = vmatprep.subr.mxu0 %v462_v18  ;;  %3775 = vmatprep.subr.mxu1 %v355_v19 }
  0xd5   :  { %3762 = vmatpush3.msra.mxu0 %v462_v18  ;;  %3776 = vmatpush3.msra.mxu1 %v355_v19  ;;  %v970_v18 = vld [vmem:[#allocation8 + $0x28] sm:$0xff]  ;;  %v1062_v19 = vld [vmem:[#allocation8 + $0x60] sm:$0xff] }
  0xd6   :  { %3763 = vmatprep.subr.mxu0 %v461_v20  ;;  %3777 = vmatprep.subr.mxu1 %v354_v21 }
  0xd7   :  { %3764 = vmatpush3.msra.mxu0 %v461_v20  ;;  %3778 = vmatpush3.msra.mxu1 %v354_v21  ;;  %v969_v20 = vld [vmem:[#allocation8 + $0x20] sm:$0xff]  ;;  %v1061_v21 = vld [vmem:[#allocation8 + $0x58] sm:$0xff] }
  0xd8   :  { %3765 = vmatprep.subr.mxu0 %v460_v22  ;;  %3779 = vmatprep.subr.mxu1 %v353_v23 }
  0xd9   :  { %3766 = vmatpush3.msra.mxu0 %v460_v22  ;;  %3780 = vmatpush3.msra.mxu1 %v353_v23  ;;  %v968_v22 = vld [vmem:[#allocation8 + $0x18] sm:$0xff]  ;;  %v1060_v23 = vld [vmem:[#allocation8 + $0x50] sm:$0xff] }
  0xda   :  { %3787 = vmatprep.subr.mxu0 %v4719_v0  ;;  %3809 = vmatprep.subr.mxu1 %v765_v36 }
 0x18f   :  { %v3733_v24 = vpop.f32.mrf.mxu0  ;;  %v3755_v25 = vpop.f32.mrf.mxu1 }
 0x191   :  { %v334_v26 = vpop.f32.mrf.mxu0  ;;  %v440_v27 = vpop.f32.mrf.mxu1 }
 0x192   :  { %3767 = vmatprep.mubr.msk.f32.mxu0 %vm464_vm1, %v440_v27  ;;  %3781 = vmatprep.mubr.msk.f32.mxu1 %vm464_vm1, %v334_v26  ;;  %v1058_v26 = vld [vmem:[#allocation8 + $0x40] sm:$0xff]  ;;  %v966_v27 = vld [vmem:[#allocation8 + $0x8] sm:$0xff] }
 0x193   :  { %3768 = vmatmul.mubr.msk.f32.vlgmr.msra.gmra.mxu0 %vm464_vm1, %v3755_v25  ;;  %3782 = vmatmul.mubr.msk.f32.vlgmr.msra.gmra.mxu1 %vm464_vm1, %v3733_v24  ;;  %v3736_v28 = vpop.f32.mrf.mxu0  ;;  %v3758_v29 = vpop.f32.mrf.mxu1  ;;  %v967_v24 = vld [vmem:[#allocation8 + $0x10] sm:$0xff]  ;;  %v1059_v25 = vld [vmem:[#allocation8 + $0x48] sm:$0xff] }
 0x194   :  { %3788 = vmatpush3.msra.mxu0 %v4719_v0  ;;  %3810 = vmatpush3.msra.mxu1 %v765_v36  ;;  %v1318_v36 = vld [vmem:[#allocation8 + $0xa8] sm:$0xff] }
 0x195   :  { %3789 = vmatprep.subr.mxu0 %v4724_v1  ;;  %v344_v30 = vpop.f32.mrf.mxu0  ;;  %v450_v31 = vpop.f32.mrf.mxu1  ;;  %3811 = vmatprep.subr.mxu1 %v764_v37 }
 0x196   :  { %3790 = vmatpush3.msra.mxu0 %v4724_v1  ;;  %3770 = vmatprep.mubr.msk.f32.mxu0 %vm464_vm1, %v450_v31 }
 0x197   :  { %3791 = vmatprep.subr.mxu0 %v4733_v2  ;;  %3784 = vmatprep.mubr.msk.f32.mxu1 %vm464_vm1, %v344_v30 }
 0x198   :  { %3792 = vmatpush3.msra.mxu0 %v4733_v2  ;;  %3785 = vmatmul.mubr.msk.f32.gmra.mxu1 %vm464_vm1, %v3736_v28  ;;  %v965_v28 = vld [vmem:[#allocation8] sm:$0xff] }
 0x199   :  { %3793 = vmatprep.subr.mxu0 %v4742_v3  ;;  %3771 = vmatmul.mubr.msk.f32.gmra.mxu0 %vm464_vm1, %v3758_v29  ;;  %v1320_v29 = vld [vmem:[#allocation8 + $0xb8] sm:$0xff] }
 0x19a   :  { %3794 = vmatpush3.msra.mxu0 %v4742_v3  ;;  %3803 = vmatprep.mubr.msk.f32.mxu0 %vm255_vm0, %v3466_v32 }
 0x19b   :  { %3795 = vmatprep.subr.mxu0 %v4751_v4  ;;  %3812 = vmatpush3.msra.mxu1 %v764_v37  ;;  %v1230_v37 = vld [vmem:[#allocation7 + $0x28] sm:$0xff] }
 0x19c   :  { %3796 = vmatpush3.msra.mxu0 %v4751_v4  ;;  %3813 = vmatprep.subr.mxu1 %v763_v38 }
 0x19d   :  { %3797 = vmatprep.subr.mxu0 %v4760_v5  ;;  %3814 = vmatpush3.msra.mxu1 %v763_v38  ;;  %v1317_v38 = vld [vmem:[#allocation8 + $0xa0] sm:$0xff] }
 0x19e   :  { %3798 = vmatpush3.msra.mxu0 %v4760_v5  ;;  %3815 = vmatprep.subr.mxu1 %v762_v39 }
 0x19f   :  { %3799 = vmatprep.subr.mxu0 %v4769_v6  ;;  %3816 = vmatpush3.msra.mxu1 %v762_v39  ;;  %v1316_v39 = vld [vmem:[#allocation8 + $0x98] sm:$0xff] }
 0x1a0   :  { %3800 = vmatpush3.msra.mxu0 %v4769_v6 }
 0x1a1   :  { %3801 = vmatprep.subr.mxu0 %v4778_v7 }
 0x1a2   :  { %3802 = vmatpush3.msra.mxu0 %v4778_v7 }
 0x1a3   :  { %3804 = vmatmul.mubr.msk.f32.vlgmr.msra.gmra.mxu0 %vm255_vm0, %v3467_v33 }
 0x1a4   :  { %3806 = vmatprep.mubr.msk.f32.mxu0 %vm255_vm0, %v3468_v34  ;;  %v1229_v34 = vld [vmem:[#allocation7 + $0x20] sm:$0xff] }
 0x1a7   :  { %3807 = vmatmul.mubr.msk.f32.gmra.mxu0 %vm255_vm0, %v3469_v35  ;;  %v1319_v35 = vld [vmem:[#allocation8 + $0xb0] sm:$0xff] }
 0x1a8   :  { %3842 = vmatprep.mubr.msk.f32.mxu0 %vm464_vm1, %v974_v49  ;;  %v1496_v49 = vld [vmem:[#allocation13 + $0x30] sm:$0xff] }
 0x253   :  { %v3769_v40 = vpop.f32.mrf.mxu0  ;;  %v3783_v50 = vpop.f32.mrf.mxu1 }
 0x254   :  { %v646_v56 = vadd.f32 %v3783_v50, %v3769_v40  ;;  %v1315_v40 = vld [vmem:[#allocation8 + $0x90] sm:$0xff]  ;;  %v1495_v50 = vld [vmem:[#allocation13 + $0x28] sm:$0xff] }
 0x255   :  { %v543_v41 = vpop.f32.mrf.mxu0  ;;  %v640_v51 = vpop.f32.mrf.mxu1 }
 0x256   :  { %v641_v59 = vadd.f32 %v640_v51, %v543_v41  ;;  %v1314_v41 = vld [vmem:[#allocation8 + $0x88] sm:$0xff]  ;;  %v1494_v51 = vld [vmem:[#allocation13 + $0x20] sm:$0xff] }
 0x258   :  { %v3786_v52 = vpop.f32.mrf.mxu1 }
 0x259   :  { %v3772_v42 = vpop.f32.mrf.mxu0 }
 0x25a   :  { %v650_v53 = vpop.f32.mrf.mxu1  ;;  %v656_v57 = vadd.f32 %v3786_v52, %v3772_v42  ;;  %v1313_v42 = vld [vmem:[#allocation8 + $0x80] sm:$0xff]  ;;  %v1493_v52 = vld [vmem:[#allocation13 + $0x18] sm:$0xff] }
 0x25b   :  { %v553_v43 = vpop.f32.mrf.mxu0 }
 0x25c   :  { %v651_v60 = vadd.f32 %v650_v53, %v553_v43  ;;  %v1492_v53 = vld [vmem:[#allocation13 + $0x10] sm:$0xff] }
 0x263   :  { %v3805_v44 = vpop.f32.mrf.mxu0 }
 0x265   :  { %v742_v45 = vpop.f32.mrf.mxu0 }
 0x266   :  { %3817 = vmatprep.mubr.msk.f32.mxu1 %vm464_vm1, %v742_v45 }
 0x267   :  { %v3808_v46 = vpop.f32.mrf.mxu0  ;;  %3818 = vmatmul.mubr.msk.f32.vlgmr.msra.gmra.mxu1 %vm464_vm1, %v3805_v44 }
 0x269   :  { %v752_v47 = vpop.f32.mrf.mxu0 }
 0x26a   :  { %3820 = vmatprep.mubr.msk.f32.mxu1 %vm464_vm1, %v752_v47  ;;  %v4535_v47 = vmov 0.0  }
 0x26b   :  { %3821 = vmatmul.mubr.msk.f32.gmra.mxu1 %vm464_vm1, %v3808_v46 }
 0x26c   :  { %3831 = vmatprep.mubr.msk.f32.mxu1 %vm464_vm1, %v882_v48  ;;  %v1497_v48 = vld [vmem:[#allocation13 + $0x38] sm:$0xff] }
 0x327   :  { %v3819_v54 = vpop.f32.mrf.mxu1 }
 0x328   :  { %v864_v61 = vadd.f32 %v3819_v54, %v646_v56  ;;  %v1491_v54 = vld [vmem:[#allocation13 + $0x8] sm:$0xff] }
 0x329   :  { %v844_v55 = vpop.f32.mrf.mxu1 }
 0x32a   :  { %v863_v1 = vadd.f32 %v844_v55, %v641_v59  ;;  %v875_v4 = vadd.f32 %v3478_v63, %v864_v61  ;;  %v3491_v59 = vld [vmem:[#allocation10] ss:$0 sm:$0xff] }
 0x32b   :  { %v3822_v58 = vpop.f32.mrf.mxu1 }
 0x32c   :  { %v866_v62 = vadd.f32 %v3822_v58, %v656_v57  ;;  %v874_v7 = vadd.f32 %v3478_v63, %v863_v1  ;;  %v4874_v9 = vmax.f32 %v875_v4, 0.0  ;;  %v1415_v4 = vld [vmem:[#allocation11] sm:$0xff] }
 0x32d   :  { %v854_v0 = vpop.f32.mrf.mxu1 }
 0x32e   :  { %v877_v2 = vadd.f32 %v3478_v63, %v866_v62  ;;  %v865_v3 = vadd.f32 %v854_v0, %v651_v60  ;;  %v4880_v10 = vmax.f32 %v874_v7, 0.0  ;;  %v1580_v7 = vld [vmem:[#allocation13 + $0x70] sm:$0xff] }
 0x330   :  { %v4866_v5 = vmax.f32 %v877_v2, 0.0  ;;  %v876_v6 = vadd.f32 %v3478_v63, %v865_v3 }
 0x332   :  { %v4868_v8 = vmax.f32 %v876_v6, 0.0  ;;  %3823 = vmatprep.subr.mxu1 %v4866_v5  ;;  %3834 = vmatprep.subr.mxu0 %v4866_v5  ;;  %v1581_v6 = vld [vmem:[#allocation13 + $0x78] sm:$0xff] }
 0x333   :  { %3824 = vmatpush3.msra.mxu1 %v4866_v5  ;;  %3835 = vmatpush3.msra.mxu0 %v4866_v5 }
 0x334   :  { %3825 = vmatprep.subr.mxu1 %v4868_v8  ;;  %3836 = vmatprep.subr.mxu0 %v4868_v8 }
 0x335   :  { %3826 = vmatpush3.msra.mxu1 %v4868_v8  ;;  %3837 = vmatpush3.msra.mxu0 %v4868_v8 }
 0x336   :  { %3827 = vmatprep.subr.mxu1 %v4874_v9  ;;  %3838 = vmatprep.subr.mxu0 %v4874_v9 }
 0x337   :  { %3828 = vmatpush3.msra.mxu1 %v4874_v9  ;;  %3839 = vmatpush3.msra.mxu0 %v4874_v9 }
 0x338   :  { %3829 = vmatprep.subr.mxu1 %v4880_v10  ;;  %3840 = vmatprep.subr.mxu0 %v4880_v10 }
 0x339   :  { %3830 = vmatpush3.msra.mxu1 %v4880_v10  ;;  %3841 = vmatpush3.msra.mxu0 %v4880_v10 }
 0x33a   :  { %3832 = vmatmul.mubr.msk.f32.vlgmr.msra.gmra.mxu1 %vm464_vm1, %v883_v11  ;;  %3843 = vmatmul.mubr.msk.f32.vlgmr.msra.gmra.mxu0 %vm464_vm1, %v975_v12  ;;  %v1576_v11 = vld [vmem:[#allocation13 + $0x50] sm:$0xff]  ;;  %v1490_v12 = vld [vmem:[#allocation13] sm:$0xff] }
 0x33b   :  { %3845 = vmatprep.subr.mxu1 %v1065_v13  ;;  %3864 = vmatprep.subr.mxu0 %v972_v14 }
 0x33c   :  { %3846 = vmatpush3.msra.mxu1 %v1065_v13  ;;  %3865 = vmatpush3.msra.mxu0 %v972_v14  ;;  %v1575_v13 = vld [vmem:[#allocation13 + $0x48] sm:$0xff]  ;;  %v1574_v14 = vld [vmem:[#allocation13 + $0x40] sm:$0xff] }
 0x33d   :  { %3847 = vmatprep.subr.mxu1 %v1064_v15  ;;  %3866 = vmatprep.subr.mxu0 %v971_v16 }
 0x33e   :  { %3848 = vmatpush3.msra.mxu1 %v1064_v15  ;;  %3867 = vmatpush3.msra.mxu0 %v971_v16 }
 0x33f   :  { %3849 = vmatprep.subr.mxu1 %v1063_v17  ;;  %3868 = vmatprep.subr.mxu0 %v970_v18 }
 0x340   :  { %3850 = vmatpush3.msra.mxu1 %v1063_v17  ;;  %3869 = vmatpush3.msra.mxu0 %v970_v18 }
 0x341   :  { %3851 = vmatprep.subr.mxu1 %v1062_v19  ;;  %3870 = vmatprep.subr.mxu0 %v969_v20 }
 0x342   :  { %3852 = vmatpush3.msra.mxu1 %v1062_v19  ;;  %3871 = vmatpush3.msra.mxu0 %v969_v20  ;;  %v1729_v19 = vld [vmem:[#allocation11 + $0x10] sm:$0xff] }
 0x343   :  { %3853 = vmatprep.subr.mxu1 %v1061_v21  ;;  %3872 = vmatprep.subr.mxu0 %v968_v22  ;;  %v1811_v20 = vld [vmem:[#allocation13 + $0xb8] sm:$0xff] }
 0x344   :  { %3854 = vmatpush3.msra.mxu1 %v1061_v21  ;;  %3873 = vmatpush3.msra.mxu0 %v968_v22  ;;  %v1810_v21 = vld [vmem:[#allocation13 + $0xb0] sm:$0xff]  ;;  %v1809_v22 = vld [vmem:[#allocation13 + $0xa8] sm:$0xff] }
 0x345   :  { %3855 = vmatprep.subr.mxu1 %v1060_v23  ;;  %3874 = vmatprep.subr.mxu0 %v967_v24 }
 0x346   :  { %3856 = vmatpush3.msra.mxu1 %v1060_v23  ;;  %3875 = vmatpush3.msra.mxu0 %v967_v24  ;;  %v1808_v23 = vld [vmem:[#allocation13 + $0xa0] sm:$0xff]  ;;  %v1807_v24 = vld [vmem:[#allocation13 + $0x98] sm:$0xff] }
 0x347   :  { %3857 = vmatprep.subr.mxu1 %v1059_v25  ;;  %3876 = vmatprep.subr.mxu0 %v966_v27 }
 0x348   :  { %3858 = vmatpush3.msra.mxu1 %v1059_v25  ;;  %3877 = vmatpush3.msra.mxu0 %v966_v27  ;;  %v1806_v25 = vld [vmem:[#allocation13 + $0x90] sm:$0xff]  ;;  %v1804_v27 = vld [vmem:[#allocation13 + $0x80] sm:$0xff] }
 0x349   :  { %3859 = vmatprep.subr.mxu1 %v1058_v26  ;;  %3878 = vmatprep.subr.mxu0 %v965_v28 }
 0x34a   :  { %3860 = vmatpush3.msra.mxu1 %v1058_v26  ;;  %3879 = vmatpush3.msra.mxu0 %v965_v28  ;;  %v1805_v26 = vld [vmem:[#allocation13 + $0x88] sm:$0xff] }
 0x34b   :  { %3883 = vmatprep.subr.mxu1 %v4866_v5  ;;  %3894 = vmatprep.subr.mxu0 %v1320_v29  ;;  %v1902_v28 = vld [vmem:[%s5171_s10 + $0x38] sm:$0xff] }
 0x3fa   :  { %v3833_v30 = vpop.f32.mrf.mxu1  ;;  %v3844_v31 = vpop.f32.mrf.mxu0 }
 0x3fc   :  { %v956_v32 = vpop.f32.mrf.mxu1  ;;  %v1048_v33 = vpop.f32.mrf.mxu0 }
 0x3fd   :  { %3861 = vmatprep.mubr.msk.f32.mxu1 %vm255_vm0, %v1048_v33  ;;  %3880 = vmatprep.mubr.msk.f32.mxu0 %vm255_vm0, %v956_v32 }
 0x3fe   :  { %3862 = vmatmul.mubr.msk.f32.vlgmr.msra.gmra.mxu1 %vm255_vm0, %v3844_v31  ;;  %3881 = vmatmul.mubr.msk.f32.vlgmr.msra.gmra.mxu0 %vm255_vm0, %v3833_v30  ;;  %v1900_v30 = vld [vmem:[%s5171_s10 + $0x28] sm:$0xff]  ;;  %v1899_v31 = vld [vmem:[%s5171_s10 + $0x20] sm:$0xff] }
 0x3ff   :  { %3884 = vmatpush3.msra.mxu1 %v4866_v5  ;;  %3891 = vmatprep.mubr.msk.f32.mxu1 %vm464_vm1, %v1229_v34  ;;  %v1499_v5 = vld [vmem:[#allocation11 + $0x8] sm:$0xff] }
 0x400   :  { %3885 = vmatprep.subr.mxu1 %v4868_v8  ;;  %3895 = vmatpush3.msra.mxu0 %v1320_v29  ;;  %v1901_v29 = vld [vmem:[%s5171_s10 + $0x30] sm:$0xff] }
 0x401   :  { %3886 = vmatpush3.msra.mxu1 %v4868_v8  ;;  %3896 = vmatprep.subr.mxu0 %v1319_v35  ;;  %v1579_v8 = vld [vmem:[#allocation13 + $0x68] sm:$0xff] }
 0x402   :  { %3887 = vmatprep.subr.mxu1 %v4874_v9  ;;  %3897 = vmatpush3.msra.mxu0 %v1319_v35 }
 0x403   :  { %3888 = vmatpush3.msra.mxu1 %v4874_v9  ;;  %3898 = vmatprep.subr.mxu0 %v1318_v36  ;;  %v1578_v9 = vld [vmem:[#allocation13 + $0x60] sm:$0xff] }
 0x404   :  { %3889 = vmatprep.subr.mxu1 %v4880_v10  ;;  %3899 = vmatpush3.msra.mxu0 %v1318_v36 }
 0x405   :  { %3890 = vmatpush3.msra.mxu1 %v4880_v10  ;;  %3900 = vmatprep.subr.mxu0 %v1317_v38  ;;  %v1577_v10 = vld [vmem:[#allocation13 + $0x58] sm:$0xff] }
 0x406   :  { %3892 = vmatmul.mubr.msk.f32.vlgmr.msra.gmra.mxu1 %vm464_vm1, %v1230_v37  ;;  %3901 = vmatpush3.msra.mxu0 %v1317_v38  ;;  %v4978_v37 = vld [vmem:[%s5173_s12 + $0x8] sm:$0xff] }
 0x407   :  { %3902 = vmatprep.subr.mxu0 %v1316_v39  ;;  %3913 = vmatprep.subr.mxu1 %v4535_v47 }
 0x408   :  { %3903 = vmatpush3.msra.mxu0 %v1316_v39  ;;  %3917 = vmatprep.mubr.msk.f32.mxu1 %vm4536_vm2, %v4535_v47  ;;  %v4984_v39 = vld [vmem:[%s5173_s12] sm:$0xff] }
 0x409   :  { %3904 = vmatprep.subr.mxu0 %v1315_v40 }
 0x40a   :  { %3905 = vmatpush3.msra.mxu0 %v1315_v40 }
 0x40b   :  { %3906 = vmatprep.subr.mxu0 %v1314_v41 }
 0x40c   :  { %3907 = vmatpush3.msra.mxu0 %v1314_v41  ;;  %v1898_v41 = vld [vmem:[%s5171_s10 + $0x18] sm:$0xff] }
 0x40d   :  { %3908 = vmatprep.subr.mxu0 %v1313_v42 }
 0x40e   :  { %3909 = vmatpush3.msra.mxu0 %v1313_v42  ;;  %v1897_v42 = vld [vmem:[%s5171_s10 + $0x10] sm:$0xff] }
 0x40f   :  { %3946 = vmatprep.subr.mxu0 %v4535_v47 }
 0x4be   :  { %v3863_v43 = vpop.f32.mrf.mxu1  ;;  %v3882_v55 = vpop.f32.mrf.mxu0 }
 0x4bf   :  { %v1225_v57 = vadd.f32 %v3882_v55, %v3863_v43  ;;  %v1896_v43 = vld [vmem:[%s5171_s10 + $0x8] sm:$0xff] }
 0x4c0   :  { %v1138_v44 = vpop.f32.mrf.mxu1  ;;  %v1219_v56 = vpop.f32.mrf.mxu0 }
 0x4c1   :  { %v1220_v60 = vadd.f32 %v1219_v56, %v1138_v44  ;;  %v1895_v44 = vld [vmem:[%s5171_s10] sm:$0xff]  ;;  %s4537_s10 = smov 96   ;;  %v3499_v56 = vld [vmem:[#allocation16] ss:$0 sm:$0xff] }
 0x4c6   :  { %v3893_v45 = vpop.f32.mrf.mxu1 }
 0x4c8   :  { %v1303_v46 = vpop.f32.mrf.mxu1 }
 0x4c9   :  { %3910 = vmatprep.mubr.msk.f32.mxu0 %vm255_vm0, %v1303_v46  ;;  %v3498_v46 = vld [vmem:[#allocation14] ss:$0 sm:$0xff] }
 0x4ca   :  { %3911 = vmatmul.mubr.msk.f32.vlgmr.msra.gmra.mxu0 %vm255_vm0, %v3893_v45 }
 0x4cb   :  { %3962 = vmatprep.mubr.msk.f32.mxu0 %vm4536_vm2, %v4535_v47  ;;  %3947 = vmatpush3.msra.mxu0 %v1497_v48 }
 0x4cc   :  { %3948 = vmatprep.subr.mxu0 %v4535_v47 }
 0x4cd   :  { %3949 = vmatpush3.msra.mxu0 %v1496_v49 }
 0x4ce   :  { %3950 = vmatprep.subr.mxu0 %v4535_v47 }
 0x4cf   :  { %3951 = vmatpush3.msra.mxu0 %v1495_v50  ;;  %v5015_v50 = vld [vmem:[#allocation17] ss:$0 sm:$0xff] }
 0x4d0   :  { %3952 = vmatprep.subr.mxu0 %v4535_v47 }
 0x4d1   :  { %3953 = vmatpush3.msra.mxu0 %v1494_v51 }
 0x4d2   :  { %3954 = vmatprep.subr.mxu0 %v4535_v47 }
 0x4d3   :  { %3955 = vmatpush3.msra.mxu0 %v1493_v52 }
 0x4d4   :  { %3956 = vmatprep.subr.mxu0 %v4535_v47 }
 0x4d5   :  { %3957 = vmatpush3.msra.mxu0 %v1492_v53 }
 0x4d6   :  { %3958 = vmatprep.subr.mxu0 %v4535_v47 }
 0x4d7   :  { %3959 = vmatpush3.msra.mxu0 %v1491_v54 }
 0x4d8   :  { %3960 = vmatprep.subr.mxu0 %v4535_v47 }
 0x4d9   :  { %3961 = vmatpush3.msra.mxu0 %v1490_v12 }
 0x4da   :  { %3991 = vmatprep.subr.mxu0 %v4535_v47 }
 0x58a   :  { %v3912_v58 = vpop.f32.mrf.mxu0 }
 0x58b   :  { %v1403_v61 = vadd.f32 %v3912_v58, %v1225_v57 }
 0x58c   :  { %v1393_v62 = vpop.f32.mrf.mxu0 }
 0x58d   :  { %v1412_v63 = vadd.f32 %v3491_v59, %v1403_v61  ;;  %v1402_v0 = vadd.f32 %v1393_v62, %v1220_v60 }
 0x58f   :  { %v1414_v1 = vmax.f32 %v1412_v63, 0.0  ;;  %v1411_v2 = vadd.f32 %v3491_v59, %v1402_v0 }
 0x591   :  { %v1413_v3 = vmax.f32 %v1411_v2, 0.0  ;;  %3914 = vmatpush3.msra.mxu1 %v1414_v1 }
 0x592   :  { %3915 = vmatprep.subr.mxu1 %v4535_v47 }
 0x593   :  { %3916 = vmatpush3.msra.mxu1 %v1413_v3 }
 0x594   :  { %3918 = vmatmul.mubr.msk.f32.vlgmr.msra.gmra.mxu1 %vm1416_vm3, %v1415_v4  ;;  %3920 = vmatprep.subr.mxu1 %v4535_v47 }
 0x595   :  { %3921 = vmatpush3.msra.mxu1 %v1414_v1  ;;  %3924 = vmatprep.mubr.msk.f32.mxu1 %vm4536_vm2, %v4535_v47 }
 0x596   :  { %3922 = vmatprep.subr.mxu1 %v4535_v47 }
 0x597   :  { %3923 = vmatpush3.msra.mxu1 %v1413_v3 }
 0x598   :  { %3925 = vmatmul.mubr.msk.f32.vlgmr.msra.gmra.mxu1 %vm1416_vm3, %v1499_v5  ;;  %3927 = vmatprep.subr.mxu1 %v4535_v47 }
 0x599   :  { %3928 = vmatpush3.msra.mxu1 %v1581_v6  ;;  %3943 = vmatprep.mubr.msk.f32.mxu1 %vm4536_vm2, %v4535_v47 }
 0x59a   :  { %3929 = vmatprep.subr.mxu1 %v4535_v47 }
 0x59b   :  { %3930 = vmatpush3.msra.mxu1 %v1580_v7 }
 0x59c   :  { %3931 = vmatprep.subr.mxu1 %v4535_v47 }
 0x59d   :  { %3932 = vmatpush3.msra.mxu1 %v1579_v8 }
 0x59e   :  { %3933 = vmatprep.subr.mxu1 %v4535_v47 }
 0x59f   :  { %3934 = vmatpush3.msra.mxu1 %v1578_v9 }
 0x5a0   :  { %3935 = vmatprep.subr.mxu1 %v4535_v47 }
 0x5a1   :  { %3936 = vmatpush3.msra.mxu1 %v1577_v10 }
 0x5a2   :  { %3937 = vmatprep.subr.mxu1 %v4535_v47 }
 0x5a3   :  { %3938 = vmatpush3.msra.mxu1 %v1576_v11 }
 0x5a4   :  { %3939 = vmatprep.subr.mxu1 %v4535_v47 }
 0x5a5   :  { %3940 = vmatpush3.msra.mxu1 %v1575_v13 }
 0x5a6   :  { %3941 = vmatprep.subr.mxu1 %v4535_v47 }
 0x5a7   :  { %3942 = vmatpush3.msra.mxu1 %v1574_v14 }
 0x5a8   :  { %3965 = vmatprep.subr.mxu1 %v4535_v47 }
 0x654   :  { %v1486_v15 = vpop.f32.mrf.mxu1 }
 0x655   :  { %3963 = vmatmul.mubr.msk.f32.vlgmr.msra.gmra.mxu0 %vm255_vm0, %v1486_v15 }
 0x656   :  { %v3919_v16 = vpop.f32.mrf.mxu1  ;;  %4007 = vmatprep.mubr.msk.f32.mxu0 %vm4536_vm2, %v4535_v47  ;;  %3992 = vmatpush3.msra.mxu0 %v1902_v28 }
 0x657   :  { %3993 = vmatprep.subr.mxu0 %v4535_v47 }
 0x658   :  { %v1569_v17 = vpop.f32.mrf.mxu1  ;;  %3994 = vmatpush3.msra.mxu0 %v1901_v29 }
 0x659   :  { %3944 = vmatmul.mubr.msk.f32.vlgmr.msra.gmra.mxu1 %vm255_vm0, %v1569_v17  ;;  %3995 = vmatprep.subr.mxu0 %v4535_v47 }
 0x65a   :  { %3966 = vmatpush3.msra.mxu1 %v1414_v1  ;;  %v3926_v18 = vpop.f32.mrf.mxu1  ;;  %3969 = vmatprep.mubr.msk.f32.mxu1 %vm4536_vm2, %v4535_v47 }
 0x65b   :  { %3967 = vmatprep.subr.mxu1 %v4535_v47  ;;  %3996 = vmatpush3.msra.mxu0 %v1900_v30 }
 0x65c   :  { %3968 = vmatpush3.msra.mxu1 %v1413_v3  ;;  %3997 = vmatprep.subr.mxu0 %v4535_v47 }
 0x65d   :  { %3970 = vmatmul.mubr.msk.f32.vlgmr.msra.gmra.mxu1 %vm1416_vm3, %v1729_v19  ;;  %3972 = vmatprep.subr.mxu1 %v4535_v47 }
 0x65e   :  { %3973 = vmatpush3.msra.mxu1 %v1811_v20  ;;  %3988 = vmatprep.mubr.msk.f32.mxu1 %vm4536_vm2, %v4535_v47 }
 0x65f   :  { %3974 = vmatprep.subr.mxu1 %v4535_v47  ;;  %3998 = vmatpush3.msra.mxu0 %v1899_v31 }
 0x660   :  { %3975 = vmatpush3.msra.mxu1 %v1810_v21  ;;  %3999 = vmatprep.subr.mxu0 %v4535_v47 }
 0x661   :  { %3976 = vmatprep.subr.mxu1 %v4535_v47  ;;  %4000 = vmatpush3.msra.mxu0 %v1898_v41 }
 0x662   :  { %3977 = vmatpush3.msra.mxu1 %v1809_v22  ;;  %4001 = vmatprep.subr.mxu0 %v4535_v47 }
 0x663   :  { %3978 = vmatprep.subr.mxu1 %v4535_v47  ;;  %4002 = vmatpush3.msra.mxu0 %v1897_v42 }
 0x664   :  { %3979 = vmatpush3.msra.mxu1 %v1808_v23  ;;  %4003 = vmatprep.subr.mxu0 %v4535_v47 }
 0x665   :  { %3980 = vmatprep.subr.mxu1 %v4535_v47  ;;  %4004 = vmatpush3.msra.mxu0 %v1896_v43 }
 0x666   :  { %3981 = vmatpush3.msra.mxu1 %v1807_v24  ;;  %4005 = vmatprep.subr.mxu0 %v4535_v47 }
 0x667   :  { %3982 = vmatprep.subr.mxu1 %v4535_v47  ;;  %4006 = vmatpush3.msra.mxu0 %v1895_v44 }
 0x668   :  { %3983 = vmatpush3.msra.mxu1 %v1806_v25  ;;  %4031 = vmatprep.subr.mxu0 %v4535_v47 }
 0x669   :  { %3984 = vmatprep.subr.mxu1 %v4535_v47 }
 0x66a   :  { %3985 = vmatpush3.msra.mxu1 %v1805_v26 }
 0x66b   :  { %3986 = vmatprep.subr.mxu1 %v4535_v47 }
 0x66c   :  { %3987 = vmatpush3.msra.mxu1 %v1804_v27 }
 0x66d   :  { %4010 = vmatprep.subr.mxu1 %v4535_v47 }
 0x715   :  { %v1724_v32 = vpop.f32.mrf.mxu0 }
 0x717   :  { %v3964_v33 = vpop.f32.mrf.mxu0 }
 0x719   :  { %v1651_v34 = vpop.f32.mrf.mxu1 }
 0x71a   :  { %v1725_v35 = vadd.f32 %v1724_v32, %v1651_v34 }
 0x71b   :  { %v3945_v36 = vpop.f32.mrf.mxu1 }
 0x71d   :  { %v1799_v38 = vpop.f32.mrf.mxu1 }
 0x71e   :  { %3989 = vmatmul.mubr.msk.f32.vlgmr.msra.gmra.mxu1 %vm255_vm0, %v1799_v38 }
 0x71f   :  { %v3971_v40 = vpop.f32.mrf.mxu1  ;;  %4011 = vmatpush3.msra.mxu1 %v4978_v37  ;;  %4014 = vmatprep.mubr.msk.f32.mxu1 %vm4536_vm2, %v4535_v47 }
 0x720   :  { %4012 = vmatprep.subr.mxu1 %v4535_v47 }
 0x721   :  { %4013 = vmatpush3.msra.mxu1 %v4984_v39 }
 0x722   :  { %4015 = vmatmul.mubr.f32.vlgmr.msra.gmra.mxu1 %v4535_v47  ;;  %4017 = vmatprep.subr.mxu1 %v4535_v47 }
 0x723   :  { %4018 = vmatpush3.msra.mxu1 %v4978_v37  ;;  %4021 = vmatprep.mubr.msk.f32.mxu1 %vm4536_vm2, %v4535_v47 }
 0x724   :  { %4019 = vmatprep.subr.mxu1 %v4535_v47 }
 0x725   :  { %4020 = vmatpush3.msra.mxu1 %v4984_v39 }
 0x726   :  { %4024 = vmatprep.subr.mxu1 %v4535_v47 }
 0x7de   :  { %v1881_v45 = vpop.f32.mrf.mxu1 }
 0x7df   :  { %v1885_v48 = vadd.f32 %v1881_v45, %v1725_v35 }
 0x7e0   :  { %v3990_v49 = vpop.f32.mrf.mxu1 }
 0x7e1   :  { %v1893_v51 = vadd.f32 %v3498_v46, %v1885_v48 }
 0x7e2   :  { %v2061_v52 = vpop.f32.mrf.mxu1 }
 0x7e3   :  { %v1894_v53 = vmax.f32 %v1893_v51, 0.0  ;;  %v2062_v54 = vadd.f32 %v5015_v50, %v2061_v52 }
 0x7e4   :  { %v4016_v55 = vpop.f32.mrf.mxu1 }
 0x7e5   :  { %4008 = vmatmul.mubr.msk.f32.vlgmr.msra.gmra.mxu0 %vm255_vm0, %v1894_v53  ;;  %2073 = vrot.lane.b32.xlu0 %v2062_v54, %s4537_s10 }
 0x7e6   :  { %4032 = vmatpush3.msra.mxu0 %v4978_v37  ;;  %4035 = vmatprep.mubr.msk.f32.mxu0 %vm4536_vm2, %v4535_v47 }
 0x7e7   :  { %4033 = vmatprep.subr.mxu0 %v4535_v47 }
 0x7e8   :  { %4034 = vmatpush3.msra.mxu0 %v4984_v39 }
 0x7e9   :  { %4045 = vmatprep.subr.mxu0 %v4535_v47 }
 0x857   :  { %v2074_v1 = vpop.permute.xlu0 %2073 }
 0x8a5   :  { %v1979_v57 = vpop.f32.mrf.mxu0 }
 0x8a6   :  { %v5026_v58 = vadd.f32 %v3499_v56, %v1979_v57 }
 0x8a7   :  { %v4009_v59 = vpop.f32.mrf.mxu0 }
 0x8a8   :  { %v2065_v60 = vadd.f32 %v2062_v54, %v5026_v58 }
 0x8aa   :  { %v2066_v61 = vsub.f32 0.0, %v2065_v60 }
 0x8ac   :  { %v2067_v62 = vmul.f32 1.442695, %v2066_v61 }
 0x8ae   :  { %4133 = vpow2.f32 %v2067_v62 }
 0x8bb   :  { %v4134_v63 = vpop.eup %4133 }
 0x8bc   :  { %v2069_v0 = vadd.f32 1.0, %v4134_v63 }
 0x8be   :  { %4135 = vrcp.f32 %v2069_v0 }
 0x8cb   :  { %v4136_v2 = vpop.eup %4135 }
 0x8cc   :  { %v2076_v3 = vmul.f32 %v4136_v2, %v2074_v1  ;;  %v2083_v7 = vsub.f32 1.0, %v4136_v2  ;;  %v2089_v9 = vmul.f32 0.0, %v4136_v2 }
 0x8ce   :  { %2078 = vrot.lane.b32.xlu0 %v2076_v3, %s4538_s8 }
 0x940   :  { %v2079_v4 = vpop.permute.xlu0 %2078 }
 0x941   :  { %v2081_v5 = vadd.f32 %v2079_v4, %v5026_v58 }
 0x943   :  { %4137 = vtanh.f32 %v2081_v5 }
 0x950   :  { %v4138_v6 = vpop.eup %4137 }
 0x951   :  { %2085 = vrot.lane.b32.xlu1 %v4138_v6, %s4539_s30 }
 0x9c3   :  { %v2086_v8 = vpop.permute.xlu1 %2085 }
 0x9c4   :  { %v2088_v10 = vmul.f32 %v2086_v8, %v2083_v7 }
 0x9c6   :  { %v2090_v11 = vadd.f32 %v2089_v9, %v2088_v10 }
 0x9c8   :  { %2092 = vrot.lane.b32.xlu1 %v2090_v11, %s4539_s30  ;;  %v2192_v28 = vrot.slane %v2090_v11, 6  ;;  %v2488_v11 = vld [vmem:[#allocation22] sm:$0xff] }
 0xa3a   :  { %v2093_v12 = vpop.permute.xlu1 %2092 }
 0xa3b   :  { %4022 = vmatmul.mubr.msk.f32.vlgmr.msra.gmra.mxu1 %vm1416_vm3, %v2093_v12  ;;  %v2486_v12 = vld [vmem:[#allocation20] sm:$0xff] }
 0xa3c   :  { %4025 = vmatpush3.msra.mxu1 %v4978_v37  ;;  %4028 = vmatprep.mubr.msk.f32.mxu1 %vm4536_vm2, %v4535_v47 }
 0xa3d   :  { %4026 = vmatprep.subr.mxu1 %v4535_v47 }
 0xa3e   :  { %4027 = vmatpush3.msra.mxu1 %v4984_v39 }
 0xa3f   :  { %4038 = vmatprep.subr.mxu1 %v4535_v47 }
 0xafb   :  { %v2162_v13 = vpop.f32.mrf.mxu1 }
 0xafc   :  { %v2163_v14 = vadd.f32 %v5015_v50, %v2162_v13  ;;  %v2409_v13 = vld [vmem:[#allocation19 + $0x8] sm:$0xff] }
 0xafd   :  { %v4023_v15 = vpop.f32.mrf.mxu1 }
 0xafe   :  { %v2167_v16 = vrot.slane %v2163_v14, 6  ;;  %v2408_v14 = vld [vmem:[#allocation19] sm:$0xff] }
 0xb00   :  { %2176 = vrot.lane.b32.xlu0 %v2167_v16, %s4537_s10  ;;  %v2169_v17 = vadd.f32 %v2167_v16, %v5026_v58 }
 0xb02   :  { %v2170_v18 = vsub.f32 0.0, %v2169_v17 }
 0xb04   :  { %v2171_v19 = vmul.f32 1.442695, %v2170_v18 }
 0xb06   :  { %4139 = vpow2.f32 %v2171_v19 }
 0xb13   :  { %v4140_v20 = vpop.eup %4139 }
 0xb14   :  { %v2173_v21 = vadd.f32 1.0, %v4140_v20 }
 0xb16   :  { %4141 = vrcp.f32 %v2173_v21 }
 0xb23   :  { %v4142_v22 = vpop.eup %4141 }
 0xb24   :  { %v2186_v29 = vsub.f32 1.0, %v4142_v22  ;;  %v2194_v31 = vmul.f32 %v4142_v22, %v2192_v28 }
 0xb72   :  { %v2177_v23 = vpop.permute.xlu0 %2176 }
 0xb73   :  { %v2179_v24 = vmul.f32 %v4142_v22, %v2177_v23 }
 0xb75   :  { %2181 = vrot.lane.b32.xlu1 %v2179_v24, %s4538_s8 }
 0xbe7   :  { %v2182_v25 = vpop.permute.xlu1 %2181 }
 0xbe8   :  { %v2184_v26 = vadd.f32 %v2182_v25, %v5026_v58 }
 0xbea   :  { %4143 = vtanh.f32 %v2184_v26  ;;  %v2563_v26 = vld [vmem:[%s5178_s17] sm:$0xff] }
 0xbf7   :  { %v4144_v27 = vpop.eup %4143 }
 0xbf8   :  { %2188 = vrot.lane.b32.xlu0 %v4144_v27, %s4539_s30 }
 0xc6a   :  { %v2189_v30 = vpop.permute.xlu0 %2188 }
 0xc6b   :  { %v2191_v32 = vmul.f32 %v2189_v30, %v2186_v29 }
 0xc6d   :  { %v2195_v33 = vadd.f32 %v2194_v31, %v2191_v32 }
 0xc6f   :  { %v2197_v34 = vrot.slane %v2195_v33, 2  ;;  %v2298_v53 = vrot.slane %v2195_v33, 6 }
 0xc71   :  { %2198 = vrot.lane.b32.xlu1 %v2197_v34, %s4539_s30 }
 0xce3   :  { %v2199_v35 = vpop.permute.xlu1 %2198 }
 0xce4   :  { %4029 = vmatmul.mubr.msk.f32.vlgmr.msra.gmra.mxu1 %vm1416_vm3, %v2199_v35 }
 0xce5   :  { %4042 = vmatprep.mubr.msk.f32.mxu1 %vm4536_vm2, %v4535_v47  ;;  %4039 = vmatpush3.msra.mxu1 %v2409_v13 }
 0xce6   :  { %4040 = vmatprep.subr.mxu1 %v4535_v47 }
 0xce7   :  { %4041 = vmatpush3.msra.mxu1 %v2408_v14 }
 0xce8   :  { %4050 = vmatprep.subr.mxu1 %v4535_v47 }
 0xda4   :  { %v2268_v36 = vpop.f32.mrf.mxu1 }
 0xda5   :  { %v2269_v37 = vadd.f32 %v5015_v50, %v2268_v36 }
 0xda6   :  { %v4030_v38 = vpop.f32.mrf.mxu1 }
 0xda7   :  { %v2273_v39 = vrot.slane %v2269_v37, 4 }
 0xda9   :  { %2282 = vrot.lane.b32.xlu0 %v2273_v39, %s4537_s10  ;;  %v2275_v40 = vadd.f32 %v2273_v39, %v5026_v58 }
 0xdab   :  { %v2276_v41 = vsub.f32 0.0, %v2275_v40 }
 0xdad   :  { %v2277_v42 = vmul.f32 1.442695, %v2276_v41 }
 0xdaf   :  { %4145 = vpow2.f32 %v2277_v42 }
 0xdbc   :  { %v4146_v43 = vpop.eup %4145 }
 0xdbd   :  { %v2279_v44 = vadd.f32 1.0, %v4146_v43 }
 0xdbf   :  { %4147 = vrcp.f32 %v2279_v44 }
 0xdcc   :  { %v4148_v45 = vpop.eup %4147 }
 0xdcd   :  { %v2292_v54 = vsub.f32 1.0, %v4148_v45  ;;  %v2300_v56 = vmul.f32 %v4148_v45, %v2298_v53 }
 0xe1b   :  { %v2283_v46 = vpop.permute.xlu0 %2282 }
 0xe1c   :  { %v2285_v48 = vmul.f32 %v4148_v45, %v2283_v46 }
 0xe1e   :  { %2287 = vrot.lane.b32.xlu1 %v2285_v48, %s4538_s8 }
 0xe90   :  { %v2288_v49 = vpop.permute.xlu1 %2287 }
 0xe91   :  { %v2290_v51 = vadd.f32 %v2288_v49, %v5026_v58 }
 0xe93   :  { %4149 = vtanh.f32 %v2290_v51 }
 0xea0   :  { %v4150_v52 = vpop.eup %4149 }
 0xea1   :  { %2294 = vrot.lane.b32.xlu0 %v4150_v52, %s4539_s30 }
 0xf13   :  { %v2295_v55 = vpop.permute.xlu0 %2294 }
 0xf14   :  { %v2297_v57 = vmul.f32 %v2295_v55, %v2292_v54 }
 0xf16   :  { %v2301_v59 = vadd.f32 %v2300_v56, %v2297_v57 }
 0xf18   :  { %v2303_v60 = vrot.slane %v2301_v59, 4  ;;  %v2404_v16 = vrot.slane %v2301_v59, 6 }
 0xf1a   :  { %2304 = vrot.lane.b32.xlu1 %v2303_v60, %s4539_s30 }
 0xf8c   :  { %v2305_v61 = vpop.permute.xlu1 %2304 }
 0xf8d   :  { %4036 = vmatmul.mubr.msk.f32.vlgmr.msra.gmra.mxu0 %vm1416_vm3, %v2305_v61 }
 0xf8e   :  { %4047 = vmatprep.mubr.msk.f32.mxu0 %vm4536_vm2, %v4535_v47  ;;  %4046 = vmatpush3.msra.mxu0 %v2488_v11 }
 0xf8f   :  { %4055 = vmatprep.subr.mxu0 %v4535_v47 }
0x104d   :  { %v2374_v62 = vpop.f32.mrf.mxu0 }
0x104e   :  { %v2375_v63 = vadd.f32 %v5015_v50, %v2374_v62 }
0x104f   :  { %v4037_v0 = vpop.f32.mrf.mxu0 }
0x1050   :  { %v2379_v1 = vrot.slane %v2375_v63, 2 }
0x1052   :  { %2388 = vrot.lane.b32.xlu0 %v2379_v1, %s4537_s10  ;;  %v2381_v2 = vadd.f32 %v2379_v1, %v5026_v58 }
0x1054   :  { %v2382_v3 = vsub.f32 0.0, %v2381_v2 }
0x1056   :  { %v2383_v4 = vmul.f32 1.442695, %v2382_v3 }
0x1058   :  { %4151 = vpow2.f32 %v2383_v4 }
0x1065   :  { %v4152_v5 = vpop.eup %4151 }
0x1066   :  { %v2385_v6 = vadd.f32 1.0, %v4152_v5 }
0x1068   :  { %4153 = vrcp.f32 %v2385_v6 }
0x1075   :  { %v4154_v7 = vpop.eup %4153 }
0x1076   :  { %v2398_v17 = vsub.f32 1.0, %v4154_v7  ;;  %v2406_v19 = vmul.f32 %v4154_v7, %v2404_v16 }
0x10c4   :  { %v2389_v8 = vpop.permute.xlu0 %2388 }
0x10c5   :  { %v2391_v9 = vmul.f32 %v4154_v7, %v2389_v8 }
0x10c7   :  { %2393 = vrot.lane.b32.xlu1 %v2391_v9, %s4538_s8 }
0x1139   :  { %v2394_v10 = vpop.permute.xlu1 %2393 }
0x113a   :  { %v2396_v50 = vadd.f32 %v2394_v10, %v5026_v58 }
0x113c   :  { %4155 = vtanh.f32 %v2396_v50 }
0x113d   :  { %4157 = vtanh.f32 %v2486_v12 }
0x1149   :  { %v4156_v15 = vpop.eup %4155 }
0x114a   :  { %2400 = vrot.lane.b32.xlu0 %v4156_v15, %s4539_s30  ;;  %v4158_v58 = vpop.eup %4157 }
0x114b   :  { %4048 = vmatmul.mubr.msk.f32.vlgmr.msra.gmra.mxu0 %vm2489_vm4, %v4158_v58 }
0x114c   :  { %4057 = vmatprep.mubr.msk.f32.mxu0 %vm4536_vm2, %v4535_v47 }
0x11bc   :  { %v2401_v18 = vpop.permute.xlu0 %2400 }
0x11bd   :  { %v2403_v20 = vmul.f32 %v2401_v18, %v2398_v17 }
0x11bf   :  { %v2407_v21 = vadd.f32 %v2406_v19, %v2403_v20 }
0x11c1   :  { %v2411_v22 = vrot.slane %v2407_v21, 6 }
0x11c3   :  { %2412 = vrot.lane.b32.xlu1 %v2411_v22, %s4539_s30 }
0x120b   :  { %v2559_v23 = vpop.f32.mrf.mxu0 }
0x120c   :  { %2798 = vrot.lane.b32.xlu0 %v2559_v23, %s4540_s11  ;;  %4056 = vmatpush3.xpose.msk.msra.mxu0 %vm2489_vm4, %v2559_v23 }
0x120d   :  { %v4049_v24 = vpop.f32.mrf.mxu0  ;;  %4065 = vmatprep.subr.mxu0 %v4535_v47 }
0x1210   :  { %2965 = vrot.lane.b32.xlu0 %v2559_v23, %s4539_s30 }
0x1214   :  { %3131 = vrot.lane.b32.xlu0 %v2559_v23, %s4541_s9 }
0x1235   :  { %v2413_v25 = vpop.permute.xlu1 %2412 }
0x1236   :  { %4043 = vmatmul.mubr.msk.f32.vlgmr.msra.gmra.mxu1 %vm1416_vm3, %v2413_v25 }
0x1237   :  { %4052 = vmatprep.mubr.msk.f32.mxu1 %vm4536_vm2, %v4535_v47  ;;  %4051 = vmatpush3.msra.mxu1 %v2563_v26 }
0x1238   :  { %4060 = vmatprep.subr.mxu1 %v4535_v47 }
0x123a   :  { %4053 = vmatmul.mubr.msk.f32.vlgmr.msra.gmra.mxu1 %vm2489_vm4, %v4158_v58 }
0x123b   :  { %4062 = vmatprep.mubr.msk.f32.mxu1 %vm4536_vm2, %v4535_v47 }
0x127e   :  { %v2799_v28 = vpop.permute.xlu0 %2798 }
0x1282   :  { %v2966_v30 = vpop.permute.xlu0 %2965 }
0x1286   :  { %v3132_v33 = vpop.permute.xlu0 %3131 }
0x12f6   :  { %v2482_v27 = vpop.f32.mrf.mxu1 }
0x12f7   :  { %2796 = vrot.lane.b32.xlu1 %v2482_v27, %s4540_s11  ;;  %4058 = vmatmul.mubr.msk.f32.vlgmr.msra.gmra.mxu0 %vm2489_vm4, %v2482_v27 }
0x12f8   :  { %v4044_v29 = vpop.f32.mrf.mxu1  ;;  %4066 = vmatpush3.xpose.msk.msra.mxu0 %vm2489_vm4, %v2799_v28  ;;  %4067 = vmatprep.mubr.msk.f32.mxu0 %vm4536_vm2, %v4535_v47  ;;  %v3315_v28 = vld [vmem:[%s5179_s18 + $0x10] sm:$0xff] }
0x12f9   :  { %4075 = vmatprep.subr.mxu0 %v4535_v47  ;;  %v3314_v29 = vld [vmem:[%s5179_s18 + $0x8] sm:$0xff] }
0x12fa   :  { %v2630_v35 = vpop.f32.mrf.mxu1 }
0x12fb   :  { %2963 = vrot.lane.b32.xlu1 %v2482_v27, %s4539_s30  ;;  %4061 = vmatpush3.msra.mxu1 %v2630_v35 }
0x12fc   :  { %v4054_v38 = vpop.f32.mrf.mxu1  ;;  %4070 = vmatprep.subr.mxu1 %v4535_v47 }
0x12ff   :  { %3129 = vrot.lane.b32.xlu1 %v2482_v27, %s4541_s9  ;;  %v3316_v27 = vld [vmem:[%s5179_s18 + $0x18] sm:$0xff] }
0x1369   :  { %v2797_v31 = vpop.permute.xlu1 %2796 }
0x136a   :  { %4068 = vmatmul.mubr.msk.f32.vlgmr.msra.gmra.mxu0 %vm2489_vm4, %v2797_v31 }
0x136b   :  { %4076 = vmatpush3.xpose.msk.msra.mxu0 %vm2489_vm4, %v2966_v30  ;;  %4077 = vmatprep.mubr.msk.f32.mxu0 %vm4536_vm2, %v4535_v47  ;;  %v3313_v30 = vld [vmem:[%s5179_s18] sm:$0xff]  ;;  %s4544_s18 = smov [#allocation25]  }
0x136c   :  { %4085 = vmatprep.subr.mxu0 %v4535_v47 }
0x136d   :  { %v2964_v32 = vpop.permute.xlu1 %2963 }
0x136e   :  { %4078 = vmatmul.mubr.msk.f32.vlgmr.msra.gmra.mxu0 %vm2489_vm4, %v2964_v32 }
0x136f   :  { %4086 = vmatpush3.xpose.msk.msra.mxu0 %vm2489_vm4, %v3132_v33  ;;  %4087 = vmatprep.mubr.msk.f32.mxu0 %vm4536_vm2, %v4535_v47 }
0x1370   :  { %4095 = vmatprep.subr.mxu0 %v4535_v47 }
0x1371   :  { %v3130_v34 = vpop.permute.xlu1 %3129 }
0x1372   :  { %4088 = vmatmul.mubr.msk.f32.vlgmr.msra.gmra.mxu0 %vm2489_vm4, %v3130_v34 }
0x1373   :  { %4103 = vmatprep.mubr.msk.f32.mxu0 %vm4536_vm2, %v4535_v47  ;;  %4096 = vmatpush3.msra.mxu0 %v3316_v27 }
0x1374   :  { %4097 = vmatprep.subr.mxu0 %v4535_v47 }
0x1375   :  { %4098 = vmatpush3.msra.mxu0 %v3315_v28 }
0x1376   :  { %4099 = vmatprep.subr.mxu0 %v4535_v47 }
0x1377   :  { %4100 = vmatpush3.msra.mxu0 %v3314_v29 }
0x1378   :  { %4101 = vmatprep.subr.mxu0 %v4535_v47 }
0x1379   :  { %4102 = vmatpush3.msra.mxu0 %v3313_v30 }
0x13b7   :  { %v2706_v36 = vpop.f32.mrf.mxu0 }
0x13b8   :  { %v2710_v37 = vmul.f32 0.35355338, %v2706_v36 }
0x13b9   :  { %v4059_v39 = vpop.f32.mrf.mxu0 }
0x13ba   :  { %v2712_v40 = vsel %vm2711_vm5, %v2710_v37, -inf }
0x13bb   :  { %2713 = vmax.xlane.f32.xlu0 %v2712_v40 }
0x142a   :  { %v2870_v41 = vpop.f32.mrf.mxu0 }
0x142b   :  { %v2874_v42 = vmul.f32 0.35355338, %v2870_v41 }
0x142c   :  { %v4069_v43 = vpop.f32.mrf.mxu0 }
0x142d   :  { %v2875_v44 = vsel %vm2711_vm5, %v2874_v42, -inf }
0x142e   :  { %2876 = vmax.xlane.f32.xlu1 %v2875_v44  ;;  %v3037_v45 = vpop.f32.mrf.mxu0 }
0x142f   :  { %v3041_v46 = vmul.f32 0.35355338, %v3037_v45 }
0x1430   :  { %v4079_v48 = vpop.f32.mrf.mxu0 }
0x1431   :  { %v3042_v49 = vsel %vm2711_vm5, %v3041_v46, -inf }
0x1432   :  { %3043 = vmax.xlane.f32.xlu0 %v3042_v49  ;;  %v3203_v51 = vpop.f32.mrf.mxu0 }
0x1433   :  { %v3207_v52 = vmul.f32 0.35355338, %v3203_v51 }
0x1434   :  { %v4089_v53 = vpop.f32.mrf.mxu0 }
0x1435   :  { %v3208_v54 = vsel %vm2711_vm5, %v3207_v52, -inf }
0x1436   :  { %3209 = vmax.xlane.f32.xlu0 %v3208_v54 }
0x143f   :  { %2887 = vrot.lane.b32.xlu1 %v2630_v35, %s4540_s11 }
0x1444   :  { %v2714_v55 = vpop.xlane.xlu0 %2713 }
0x1445   :  { %v2715_v56 = vsub.f32 %v2710_v37, %v2714_v55 }
0x1447   :  { %v2716_v57 = vmul.f32 1.442695, %v2715_v56 }
0x1449   :  { %4159 = vpow2.f32 %v2716_v57 }
0x1456   :  { %v4160_v59 = vpop.eup %4159 }
0x1457   :  { %v2718_v60 = vsel %vm2711_vm5, %v4160_v59, 0.0 }
0x1463   :  { %2719 = vadd.xlane.f32.xlu1 %v2718_v60 }
0x14b7   :  { %v2877_v61 = vpop.xlane.xlu1 %2876 }
0x14b8   :  { %v2878_v62 = vsub.f32 %v2874_v42, %v2877_v61  ;;  %v3520_v42 = vld [vmem:[#allocation23] ss:$0 sm:$0xff] }
0x14ba   :  { %v2879_v63 = vmul.f32 1.442695, %v2878_v62 }
0x14bb   :  { %v3044_v0 = vpop.xlane.xlu0 %3043  ;;  %v2888_v11 = vpop.permute.xlu1 %2887 }
0x14bc   :  { %4161 = vpow2.f32 %v2879_v63  ;;  %v3045_v1 = vsub.f32 %v3041_v46, %v3044_v0 }
0x14be   :  { %v3046_v2 = vmul.f32 1.442695, %v3045_v1 }
0x14bf   :  { %v3210_v3 = vpop.xlane.xlu0 %3209 }
0x14c0   :  { %4163 = vpow2.f32 %v3046_v2  ;;  %v3211_v4 = vsub.f32 %v3207_v52, %v3210_v3 }
0x14c2   :  { %v3212_v5 = vmul.f32 1.442695, %v3211_v4 }
0x14c4   :  { %4165 = vpow2.f32 %v3212_v5 }
0x14c9   :  { %v4162_v6 = vpop.eup %4161 }
0x14ca   :  { %v2881_v7 = vsel %vm2711_vm5, %v4162_v6, 0.0 }
0x14cb   :  { %2882 = vadd.xlane.f32.xlu0 %v2881_v7 }
0x14cd   :  { %v4164_v8 = vpop.eup %4163 }
0x14ce   :  { %v3048_v9 = vsel %vm2711_vm5, %v4164_v8, 0.0 }
0x14cf   :  { %3049 = vadd.xlane.f32.xlu1 %v3048_v9 }
0x14d1   :  { %v4166_v10 = vpop.eup %4165 }
0x14d2   :  { %v3214_v50 = vsel %vm2711_vm5, %v4166_v10, 0.0 }
0x14d3   :  { %3215 = vadd.xlane.f32.xlu0 %v3214_v50 }
0x14e0   :  { %3219 = vrot.lane.b32.xlu1 %v2630_v35, %s4541_s9 }
0x14e9   :  { %3053 = vrot.lane.b32.xlu0 %v2630_v35, %s4539_s30 }
0x14ec   :  { %v2720_v12 = vpop.xlane.xlu1 %2719 }
0x14ed   :  { %4167 = vrcp.f32 %v2720_v12 }
0x14fa   :  { %v4168_v13 = vpop.eup %4167 }
0x14fb   :  { %v2722_v14 = vmul.f32 %v4168_v13, %v4160_v59 }
0x14fd   :  { %4063 = vmatmul.mubr.msk.f32.vlgmr.msra.gmra.mxu1 %vm2489_vm4, %v2722_v14 }
0x14fe   :  { %4071 = vmatpush3.msra.mxu1 %v2888_v11  ;;  %4072 = vmatprep.mubr.msk.f32.mxu1 %vm4536_vm2, %v4535_v47 }
0x14ff   :  { %4080 = vmatprep.subr.mxu1 %v4535_v47 }
0x1554   :  { %v2883_v15 = vpop.xlane.xlu0 %2882 }
0x1555   :  { %4169 = vrcp.f32 %v2883_v15 }
0x1558   :  { %v3050_v58 = vpop.xlane.xlu1 %3049 }
0x1559   :  { %4171 = vrcp.f32 %v3050_v58 }
0x155c   :  { %v3216_v16 = vpop.xlane.xlu0 %3215  ;;  %v3220_v22 = vpop.permute.xlu1 %3219 }
0x155d   :  { %4173 = vrcp.f32 %v3216_v16 }
0x1560   :  { %v3054_v19 = vpop.permute.xlu0 %3053 }
0x1562   :  { %v4170_v17 = vpop.eup %4169 }
0x1563   :  { %v2885_v18 = vmul.f32 %v4170_v17, %v4162_v6 }
0x1565   :  { %4073 = vmatmul.mubr.msk.f32.vlgmr.msra.gmra.mxu1 %vm2489_vm4, %v2885_v18 }
0x1566   :  { %v4172_v20 = vpop.eup %4171  ;;  %4081 = vmatpush3.msra.mxu1 %v3054_v19  ;;  %4082 = vmatprep.mubr.msk.f32.mxu1 %vm4536_vm2, %v4535_v47 }
0x1567   :  { %4090 = vmatprep.subr.mxu1 %v4535_v47  ;;  %v3052_v21 = vmul.f32 %v4172_v20, %v4164_v8 }
0x1569   :  { %4083 = vmatmul.mubr.msk.f32.vlgmr.msra.gmra.mxu1 %vm2489_vm4, %v3052_v21 }
0x156a   :  { %v4174_v23 = vpop.eup %4173  ;;  %4091 = vmatpush3.msra.mxu1 %v3220_v22  ;;  %4092 = vmatprep.mubr.msk.f32.mxu1 %vm4536_vm2, %v4535_v47 }
0x156b   :  { %v3218_v24 = vmul.f32 %v4174_v23, %v4166_v10 }
0x156d   :  { %4093 = vmatmul.mubr.msk.f32.vlgmr.msra.gmra.mxu1 %vm2489_vm4, %v3218_v24 }
0x15bd   :  { %v2792_v25 = vpop.f32.mrf.mxu1 }
0x15bf   :  { %v4064_v26 = vpop.f32.mrf.mxu1 }
0x1625   :  { %v2959_v31 = vpop.f32.mrf.mxu1 }
0x1626   :  { %3296 = vrot.lane.b32.xlu1 %v2959_v31, %s4523_s1  ;;  %s3416_s1 = sshll.u32 %s4544_s18, 4  ;;  %s3417_s1 = int_to_ptr.vmem [resolvable:$true] %s3416_s1 }
0x1627   :  { %v4074_v32 = vpop.f32.mrf.mxu1  ;;  %s4459_s6 = scalar_lea.vmem %s3417_s1, 32  ;;  %p4464_p1 = scmp.lt.s32.totalorder %s3417_s1, %s3417_s1 }
0x1628   :  { %p4460_p0 = scmp.ne.s32.totalorder %s3417_s1, %s4459_s6  ;;  %p4465_p2 = scmp.lt.s32.totalorder %s4459_s6, %s4459_s6 }
0x1629   :  { %v3125_v33 = vpop.f32.mrf.mxu1 }
0x162a   :  { %3300 = vrot.lane.b32.xlu0 %v3125_v33, %s4542_s25  ;;  %p4466_p3 = por %p4465_p2, %p4464_p1 }
0x162b   :  { %v4084_v34 = vpop.f32.mrf.mxu1 }
0x162c   :  { %p4467_p4 = pnand %p4466_p3, %p4460_p0 }
0x162d   :  { %v3291_v35 = vpop.f32.mrf.mxu1 }
0x162e   :  { %3304 = vrot.lane.b32.xlu1 %v3291_v35, %s4543_s19 }
0x162f   :  { %v4094_v36 = vpop.f32.mrf.mxu1 }
0x1698   :  { %v3297_v37 = vpop.permute.xlu1 %3296 }
0x1699   :  { %v3307_v47 = vsel %vm2489_vm4, %v2792_v25, %v3297_v37 }
0x169c   :  { %v3301_v38 = vpop.permute.xlu0 %3300 }
0x169d   :  { %v3308_v39 = vsel %vm1416_vm3, %v3307_v47, %v3301_v38 }
0x16a0   :  { %v3305_v40 = vpop.permute.xlu1 %3304 }
0x16a1   :  { %v3310_v41 = vsel %vm3309_vm6, %v3308_v39, %v3305_v40 }
0x16a2   :  { %4104 = vmatmul.mubr.msk.f32.vlgmr.msra.gmra.mxu0 %vm464_vm1, %v3310_v41  ;;  %3312 = vst.msk [vmem:[#allocation25] sm:$0x3] %vm3311_vm7, %v3310_v41 }
0x1762   :  { %v3393_v43 = vpop.f32.mrf.mxu0 }
0x1763   :  { %v3394_v44 = vadd.f32 %v3520_v42, %v3393_v43 }
0x1764   :  { %v4105_v45 = vpop.f32.mrf.mxu0 }
0x1765   :  { %v3398_v46 = vsel %vm3397_vm8, %v3394_v44, -inf }
0x1766   :  { %3399 = vmax.xlane.f32.xlu0 %v3398_v46 }
0x17ef   :  { %v3400_v48 = vpop.xlane.xlu0 %3399 }
0x17f0   :  { %v3401_v49 = vsub.f32 %v3394_v44, %v3400_v48 }
0x17f2   :  { %v3402_v51 = vmul.f32 1.442695, %v3401_v49 }
0x17f4   :  { %4175 = vpow2.f32 %v3402_v51 }
0x1801   :  { %v4176_v52 = vpop.eup %4175 }
0x1802   :  { %v3404_v53 = vsel %vm3397_vm8, %v4176_v52, 0.0 }
0x1803   :  { %3405 = vadd.xlane.f32.xlu1 %v3404_v53 }
0x1804   :  { %4470 = shalt.err (!%p4467_p4)
}
0x1805   :  { %3419 = dma.vmem_to_hbm [thread:$0]  %s3417_s1, 32, %s5181_s20, [#allocation4]  }
0x1806   :  { %s4545_s15 = smov [#allocation26]  }
0x1807   :  { %s3426_s5 = sshll.u32 %s4545_s15, 4  ;;  %s3427_s5 = int_to_ptr.vmem [resolvable:$true] %s3426_s5 }
0x1808   :  { %s4479_s26 = scalar_lea.vmem %s3427_s5, 32  ;;  %p4484_p6 = scmp.lt.s32.totalorder %s3427_s5, %s3427_s5 }
0x1809   :  { %p4480_p5 = scmp.ne.s32.totalorder %s3427_s5, %s4479_s26  ;;  %p4485_p7 = scmp.lt.s32.totalorder %s4479_s26, %s4479_s26 }
0x180b   :  { %p4486_p8 = por %p4485_p7, %p4484_p6 }
0x180d   :  { %p4487_p9 = pnand %p4486_p8, %p4480_p5 }
0x188c   :  { %v3406_v54 = vpop.xlane.xlu1 %3405 }
0x188d   :  { %4177 = vrcp.f32 %v3406_v54 }
0x189a   :  { %v4178_v55 = vpop.eup %4177 }
0x189b   :  { %v3408_v56 = vmul.f32 %v4178_v55, %v4176_v52 }
0x189d   :  { %3409 = vst.msk [vmem:[#allocation26] sm:$0x3] %vm3397_vm8, %v3408_v56 }
0x189e   :  { %4490 = shalt.err (!%p4487_p9)
}
0x189f   :  { %3429 = dma.vmem_to_hbm [thread:$0]  %s3427_s5, 32, %s5182_s21, [#allocation27]  }
0x18a0   :  { %4515 = dma.done.wait [#allocation4], 32  }
0x18a1   :  { %4516 = vsyncadd [#allocation4], 4294967264 }
0x18a2   :  { %4517 = dma.done.wait [#allocation27], 32  }
0x18a3   :  { %4518 = vsyncadd [#allocation27], 4294967264 }
0x18a4   :  { %3436 = vsyncpa [#allocation3], 1 }
0x18a5   :  { %3437 = vsyncpa [#allocation6], 1 }
0x18a6   :  { %3438 = vsyncpa [#allocation9], 1 }
0x18a7   :  { %3439 = vsyncpa [#allocation12], 1 }
0x18a8   :  { %3440 = vsyncpa [#allocation15], 1 }
0x18a9   :  { %3441 = vsyncpa [#allocation18], 1 }
0x18aa   :  { %3442 = vsyncpa [#allocation21], 1 }
0x18ab   :  { %3443 = vsyncpa [#allocation24], 1 }
0x18ac   :  { %3444 = vsyncpa [#allocation4], 1 }
0x18ad   :  { %3445 = vsyncpa [#allocation27], 1 }

</bundles_post_ra>
